<compile_context>
chip_gen: v5e
topology: v5e:2x2
jax: 0.10.0
libtpu: 0.0.40
codegen_flags: <defaults>
</compile_context>

<pallas_src>
import jax
import jax.numpy as jnp
from jax.experimental import pallas as pl
from jax.experimental.pallas import tpu as pltpu


# ------------------------------ helpers ------------------------------------

def _bn_relu(h, gamma, beta, eps=1e-5):
    """BatchNorm1d (training mode: batch stats, biased var) + ReLU, all f32.

    (h - mu) computed once; gamma folded into the rsqrt scale.  rsqrt lowers to
    the EUP (its own VLIW slot), keeping the VALU free."""
    mu = jnp.mean(h, axis=0, keepdims=True)
    xc = h - mu
    var = jnp.mean(xc * xc, axis=0, keepdims=True)
    scale = jax.lax.rsqrt(var + eps) * gamma          # (1, C)
    return jnp.maximum(xc * scale + beta, 0.0)


# --------------------- backbone + fused spatial mean ------------------------

def backbone_pool_forward(x_nchw, w_backbone, *, tile_hw=256):
    """Synthetic backbone (1x1 conv + ReLU) with AdaptiveAvgPool2d fused.

    x_nchw: (B, Cin, H, W)  ->  pooled: (B, 1, pred_dim) f32.
    The (B*H*W, pred_dim) feature map is never materialized in HBM: each grid
    program adds its spatial tile's contribution into the resident per-image
    (1, pred_dim) output block, then the last program scales by 1/(H*W).
    """
    B, Cin, H, W = x_nchw.shape
    pred_dim = w_backbone.shape[1]
    HW = H * W
    tile_hw = min(tile_hw, HW)
    assert HW % tile_hw == 0, "H*W must be divisible by the spatial tile"
    assert tile_hw == HW or tile_hw % 8 == 0, "spatial tile must be sublane-aligned"
    inv_hw = 1.0 / float(HW)

    # Channels-last rows for a lane-dense matmul; bf16 halves the dominant
    # HBM read of x.
    # TODO(synk): accept NHWC input upstream to avoid this XLA transpose pass.
    x_rows = (jnp.transpose(x_nchw, (0, 2, 3, 1))
              .reshape(B, HW, Cin)
              .astype(jnp.bfloat16))

    def kernel(x_ref, w_ref, o_ref):
        # x_ref: (tile_hw, Cin) bf16, w_ref: (Cin, pred_dim) bf16
        # o_ref: (1, pred_dim) f32  -- resident accumulator for this image.
        s = pl.program_id(1)

        @pl.when(s == 0)
        def _init():
            o_ref[...] = jnp.zeros_like(o_ref)

        # Tiny-K (Cin) matmul done in f32: MXU cost is negligible at K=Cin;
        # the bandwidth win already came from the bf16 HBM read of x.
        h = jnp.dot(x_ref[...].astype(jnp.float32),
                    w_ref[...].astype(jnp.float32),
                    preferred_element_type=jnp.float32)
        o_ref[...] += jnp.sum(jnp.maximum(h, 0.0), axis=0, keepdims=True)

        @pl.when(s == pl.num_programs(1) - 1)
        def _finalize():
            o_ref[...] = o_ref[...] * inv_hw

    grid = (B, HW // tile_hw)
    return pl.pallas_call(
        kernel,
        out_shape=jax.ShapeDtypeStruct((B, 1, pred_dim), jnp.float32),
        grid_spec=pltpu.PrefetchScalarGridSpec(
            num_scalar_prefetch=0,
            grid=grid,
            in_specs=[
                # row tiles of one image; double-buffered by the pipeline
                pl.BlockSpec((pl.Squeezed(), tile_hw, Cin),
                             lambda b, s: (b, s, 0)),
                # conv weight stays resident across the whole grid
                pl.BlockSpec((Cin, pred_dim), lambda b, s: (0, 0)),
            ],
            out_specs=pl.BlockSpec((pl.Squeezed(), 1, pred_dim),
                                   lambda b, s: (b, 0, 0)),
        ),
        compiler_params=pltpu.CompilerParams(
            # batch axis -> megacore parallel (v7x); spatial reduction last,
            # "arbitrary" (resident-accumulator pattern).
            dimension_semantics=("parallel", "arbitrary")),
    )(x_rows, w_backbone)


# ------------------------ projector + predictor head -------------------------

def _head_kernel(x_ref,
                 w1_ref, g1_ref, b1_ref,
                 w2_ref, g2_ref, b2_ref,
                 w3_ref, g3_ref, b3_ref,
                 w4_ref, b4_ref,
                 z_ref, p_ref):
    """One grid program == one view (so BN stats are per-view).
    x: (N, pred_dim) f32 -> z: (N, dim), p: (N, dim)."""
    x = x_ref[...]                                               # f32

    # fc (projector): Linear -> BN -> ReLU -> Linear -> BN -> ReLU
    h = jnp.dot(x.astype(jnp.bfloat16), w1_ref[...],
                preferred_element_type=jnp.float32)
    h = _bn_relu(h, g1_ref[...], b1_ref[...])
    h = jnp.dot(h.astype(jnp.bfloat16), w2_ref[...],
                preferred_element_type=jnp.float32)
    z = _bn_relu(h, g2_ref[...], b2_ref[...])                    # (N, dim)
    z_ref[...] = z

    # predictor: Linear -> BN -> ReLU -> Linear(+bias)
    h = jnp.dot(z.astype(jnp.bfloat16), w3_ref[...],
                preferred_element_type=jnp.float32)
    h = _bn_relu(h, g3_ref[...], b3_ref[...])
    p_ref[...] = (jnp.dot(h.astype(jnp.bfloat16), w4_ref[...],
                          preferred_element_type=jnp.float32)
                  + b4_ref[...])


def simsiam_head(pooled, params):
    """pooled: (2, N, pred_dim) f32 (views separated) -> z, p: each (2, N, dim)."""
    V, N, pred_dim = pooled.shape
    dim = params["w2"].shape[1]

    def wspec(shape):
        # Constant block index -> weight DMA'd once, stays resident across views.
        return pl.BlockSpec(shape, lambda v: (0,) * len(shape))

    z, p = pl.pallas_call(
        _head_kernel,
        out_shape=(
            jax.ShapeDtypeStruct((V, N, dim), jnp.float32),
            jax.ShapeDtypeStruct((V, N, dim), jnp.float32),
        ),
        grid_spec=pltpu.PrefetchScalarGridSpec(
            num_scalar_prefetch=0,
            grid=(V,),
            in_specs=[
                pl.BlockSpec((pl.Squeezed(), N, pred_dim),
                             lambda v: (v, 0, 0)),
                wspec((pred_dim, pred_dim)),        # w1 (bf16)
                wspec((1, pred_dim)),               # g1
                wspec((1, pred_dim)),               # b1
                wspec((pred_dim, dim)),             # w2 (bf16)
                wspec((1, dim)),                    # g2
                wspec((1, dim)),                    # b2
                wspec((dim, dim)),                  # w3 (bf16)
                wspec((1, dim)),                    # g3
                wspec((1, dim)),                    # b3
                wspec((dim, dim)),                  # w4 (bf16)
                wspec((1, dim)),                    # b4
            ],
            out_specs=[
                pl.BlockSpec((pl.Squeezed(), N, dim), lambda v: (v, 0, 0)),
                pl.BlockSpec((pl.Squeezed(), N, dim), lambda v: (v, 0, 0)),
            ],
        ),
        compiler_params=pltpu.CompilerParams(
            # views are independent -> megacore parallel on v7x.
            # NOTE: at realistic widths (512/2048) tile the predictor matmuls
            # over output columns / raise vmem_limit_bytes; at these sizes the
            # whole-weight residency is << VMEM.
            dimension_semantics=("parallel",)),
    )(pooled,
      params["w1"], params["g1"], params["b1"],
      params["w2"], params["g2"], params["b2"],
      params["w3"], params["g3"], params["b3"],
      params["w4"], params["b4"])
    return z, p


# ------------------------------ full forward --------------------------------

def simsiam_forward(x1, x2, w_backbone, params):
    """Mirrors SimSiam.forward: returns (p1, p2, z1, z2)."""
    N = x1.shape[0]
    # Both views in one pass (backbone weight loaded once, matmul M doubled).
    x = jnp.concatenate([x1, x2], axis=0)                  # (2N, Cin, H, W)
    pooled = backbone_pool_forward(x, w_backbone)          # (2N, 1, pred_dim)
    pooled = pooled.reshape(2, N, -1)                      # split views

    z, p = simsiam_head(pooled, params)                    # (2, N, dim) each
    z1, z2 = z[0], z[1]
    p1, p2 = p[0], p[1]
    # .detach() in the PyTorch module -> stop_gradient (no-op for pure forward).
    return p1, p2, jax.lax.stop_gradient(z1), jax.lax.stop_gradient(z2)


# ----------------------------- parameter setup ------------------------------

def init_params(key, cin, pred_dim, dim):
    ks = jax.random.split(key, 6)
    scale = 0.05
    # Linear weights stored already transposed: (in_features, out_features),
    # so y = x @ W matches PyTorch's y = x @ weight.T.  MXU operands in bf16;
    # BN affine params and the final bias stay f32.
    w_backbone = (scale * jax.random.normal(ks[0], (cin, pred_dim),
                                            jnp.float32)).astype(jnp.bfloat16)
    params = {
        "w1": (scale * jax.random.normal(ks[1], (pred_dim, pred_dim),
                                         jnp.float32)).astype(jnp.bfloat16),
        "g1": jnp.ones((1, pred_dim), jnp.float32),
        "b1": jnp.zeros((1, pred_dim), jnp.float32),
        "w2": (scale * jax.random.normal(ks[2], (pred_dim, dim),
                                         jnp.float32)).astype(jnp.bfloat16),
        "g2": jnp.ones((1, dim), jnp.float32),
        "b2": jnp.zeros((1, dim), jnp.float32),
        "w3": (scale * jax.random.normal(ks[3], (dim, dim),
                                         jnp.float32)).astype(jnp.bfloat16),
        "g3": jnp.ones((1, dim), jnp.float32),
        "b3": jnp.zeros((1, dim), jnp.float32),
        "w4": (scale * jax.random.normal(ks[4], (dim, dim),
                                         jnp.float32)).astype(jnp.bfloat16),
        "b4": scale * jax.random.normal(ks[5], (1, dim), jnp.float32),
    }
    return w_backbone, params


# ----------------------------------- main -----------------------------------

if __name__ == "__main__":
    # Small test shapes; pred_dim/dim chosen lane-dense (multiples of 128).
    N, Cin, H, W = 2, 3, 16, 16
    pred_dim, dim = 128, 256

    key = jax.random.PRNGKey(0)
    k_x1, k_x2, k_p = jax.random.split(key, 3)
    x1 = jax.random.normal(k_x1, (N, Cin, H, W), jnp.float32)  # NCHW
    x2 = jax.random.normal(k_x2, (N, Cin, H, W), jnp.float32)  # NCHW

    w_backbone, params = init_params(k_p, Cin, pred_dim, dim)

    p1, p2, z1, z2 = jax.jit(simsiam_forward)(x1, x2, w_backbone, params)
    jax.block_until_ready((p1, p2, z1, z2))

    assert p1.shape == (N, dim) and p2.shape == (N, dim)
    assert z1.shape == (N, dim) and z2.shape == (N, dim)
    assert bool(jnp.all(jnp.isfinite(p1))) and bool(jnp.all(jnp.isfinite(p2)))
    assert bool(jnp.all(jnp.isfinite(z1))) and bool(jnp.all(jnp.isfinite(z2)))
    print("KERNEL_OK")
</pallas_src>

<mosaic_0001>
module attributes {stable_mosaic.version = 11 : i64} {
  func.func @kernel(%arg0: i32, %arg1: i32, %arg2: memref<1x256x3xbf16, #tpu.memory_space<vmem>>, %arg3: memref<3x128xbf16, #tpu.memory_space<vmem>>, %arg4: memref<1x1x128xf32, #tpu.memory_space<vmem>>) attributes {dimension_semantics = [#tpu.dimension_semantics<parallel>, #tpu.dimension_semantics<arbitrary>], iteration_bounds = array<i64: 4, 1>, scalar_prefetch = 0 : i64, scratch_operands = 0 : i64, tpu.core_type = #tpu.core_type<tc>, window_params = [{transform_indices = @transform_0, window_bounds = array<i64: 1, 256, 3>}, {pipeline_mode = #tpu.pipeline_mode<synchronous>, transform_indices = @transform_1, window_bounds = array<i64: 3, 128>}, {transform_indices = @transform_2, window_bounds = array<i64: 1, 1, 128>}]} {
    %c0_i32 = arith.constant 0 : i32
    %0 = arith.cmpi eq, %arg1, %c0_i32 : i32
    %1 = arith.extui %0 : i1 to i32
    %c0_i32_0 = arith.constant 0 : i32
    %2 = arith.cmpi ne, %1, %c0_i32_0 : i32
    scf.if %2 {
      %cst_15 = arith.constant 0.000000e+00 : f32
      %22 = vector.broadcast %cst_15 : f32 to vector<1x128xf32>
      %c0_16 = arith.constant 0 : index
      %c0_17 = arith.constant 0 : index
      %c0_18 = arith.constant 0 : index
      %23 = vector.load %arg4[%c0_16, %c0_17, %c0_18] : memref<1x1x128xf32, #tpu.memory_space<vmem>>, vector<1x1x128xf32>
      %24 = vector.shape_cast %23 : vector<1x1x128xf32> to vector<1x128xf32>
      %25 = vector.shape_cast %22 : vector<1x128xf32> to vector<1x1x128xf32>
      tpu.vector_store %arg4[%c0_16, %c0_17, %c0_18], %25 {strides = array<i32>} : memref<1x1x128xf32, #tpu.memory_space<vmem>>, vector<1x1x128xf32>,
    } else {
    }
    %c0 = arith.constant 0 : index
    %c0_1 = arith.constant 0 : index
    %c0_2 = arith.constant 0 : index
    %3 = vector.load %arg2[%c0, %c0_1, %c0_2] : memref<1x256x3xbf16, #tpu.memory_space<vmem>>, vector<1x256x3xbf16>
    %4 = vector.shape_cast %3 : vector<1x256x3xbf16> to vector<256x3xbf16>
    %5 = arith.extf %4 : vector<256x3xbf16> to vector<256x3xf32>
    %c0_3 = arith.constant 0 : index
    %c0_4 = arith.constant 0 : index
    %6 = vector.load %arg3[%c0_3, %c0_4] : memref<3x128xbf16, #tpu.memory_space<vmem>>, vector<3x128xbf16>
    %7 = arith.extf %6 : vector<3x128xbf16> to vector<3x128xf32>
    %cst = arith.constant dense<0.000000e+00> : vector<256x128xf32>
    %8 = tpu.matmul %5, %7, %cst {dimension_numbers = #tpu.dot_dimension_numbers<[1], [0], [0], [1], [0, 0, 1, 1], [], []>} : vector<256x3xf32>, vector<3x128xf32>, vector<256x128xf32> -> vector<256x128xf32>
    %c0_5 = arith.constant 0 : index
    %c0_6 = arith.constant 0 : index
    %c0_7 = arith.constant 0 : index
    %9 = vector.load %arg4[%c0_5, %c0_6, %c0_7] : memref<1x1x128xf32, #tpu.memory_space<vmem>>, vector<1x1x128xf32>
    %10 = vector.shape_cast %9 : vector<1x1x128xf32> to vector<1x128xf32>
    %cst_8 = arith.constant 0.000000e+00 : f32
    %11 = vector.broadcast %cst_8 : f32 to vector<256x128xf32>
    %12 = arith.maximumf %8, %11 : vector<256x128xf32>
    %cst_9 = arith.constant dense<0.000000e+00> : vector<128xf32>
    %13 = vector.multi_reduction <add>, %12, %cst_9 [0] : vector<256x128xf32> to vector<128xf32>
    %14 = vector.shape_cast %13 : vector<128xf32> to vector<1x128xf32>
    %15 = arith.addf %10, %14 : vector<1x128xf32>
    %c0_10 = arith.constant 0 : index
    %c0_11 = arith.constant 0 : index
    %c0_12 = arith.constant 0 : index
    %16 = vector.load %arg4[%c0_10, %c0_11, %c0_12] : memref<1x1x128xf32, #tpu.memory_space<vmem>>, vector<1x1x128xf32>
    %17 = vector.shape_cast %16 : vector<1x1x128xf32> to vector<1x128xf32>
    %18 = vector.shape_cast %15 : vector<1x128xf32> to vector<1x1x128xf32>
    tpu.vector_store %arg4[%c0_10, %c0_11, %c0_12], %18 {strides = array<i32>} : memref<1x1x128xf32, #tpu.memory_space<vmem>>, vector<1x1x128xf32>,
    %c0_i32_13 = arith.constant 0 : i32
    %19 = arith.cmpi eq, %arg1, %c0_i32_13 : i32
    %20 = arith.extui %19 : i1 to i32
    %c0_i32_14 = arith.constant 0 : i32
    %21 = arith.cmpi ne, %20, %c0_i32_14 : i32
    scf.if %21 {
      %c0_15 = arith.constant 0 : index
      %c0_16 = arith.constant 0 : index
      %c0_17 = arith.constant 0 : index
      %22 = vector.load %arg4[%c0_15, %c0_16, %c0_17] : memref<1x1x128xf32, #tpu.memory_space<vmem>>, vector<1x1x128xf32>
      %23 = vector.shape_cast %22 : vector<1x1x128xf32> to vector<1x128xf32>
      %cst_18 = arith.constant 3.906250e-03 : f32
      %24 = vector.broadcast %cst_18 : f32 to vector<1x128xf32>
      %25 = arith.mulf %23, %24 : vector<1x128xf32>
      %c0_19 = arith.constant 0 : index
      %c0_20 = arith.constant 0 : index
      %c0_21 = arith.constant 0 : index
      %26 = vector.load %arg4[%c0_19, %c0_20, %c0_21] : memref<1x1x128xf32, #tpu.memory_space<vmem>>, vector<1x1x128xf32>
      %27 = vector.shape_cast %26 : vector<1x1x128xf32> to vector<1x128xf32>
      %28 = vector.shape_cast %25 : vector<1x128xf32> to vector<1x1x128xf32>
      tpu.vector_store %arg4[%c0_19, %c0_20, %c0_21], %28 {strides = array<i32>} : memref<1x1x128xf32, #tpu.memory_space<vmem>>, vector<1x1x128xf32>,
    } else {
    }
    return
  }
  func.func @transform_0(%arg0: i32, %arg1: i32) -> (i32, i32, i32) {
    %c0_i32 = arith.constant 0 : i32
    %c0_i32_0 = arith.constant 0 : i32
    return %arg0, %arg1, %c0_i32 : i32, i32, i32
  }
  func.func @transform_1(%arg0: i32, %arg1: i32) -> (i32, i32) {
    %c0_i32 = arith.constant 0 : i32
    %c0_i32_0 = arith.constant 0 : i32
    %c0_i32_1 = arith.constant 0 : i32
    return %c0_i32, %c0_i32_0 : i32, i32
  }
  func.func @transform_2(%arg0: i32, %arg1: i32) -> (i32, i32, i32) {
    %c0_i32 = arith.constant 0 : i32
    %c0_i32_0 = arith.constant 0 : i32
    %c0_i32_1 = arith.constant 0 : i32
    return %arg0, %c0_i32, %c0_i32_0 : i32, i32, i32
  }
}

module attributes {stable_mosaic.version = 11 : i64} {
  func.func @_head_kernel(%arg0: i32, %arg1: memref<1x2x128xf32, #tpu.memory_space<vmem>>, %arg2: memref<128x128xbf16, #tpu.memory_space<vmem>>, %arg3: memref<1x128xf32, #tpu.memory_space<vmem>>, %arg4: memref<1x128xf32, #tpu.memory_space<vmem>>, %arg5: memref<128x256xbf16, #tpu.memory_space<vmem>>, %arg6: memref<1x256xf32, #tpu.memory_space<vmem>>, %arg7: memref<1x256xf32, #tpu.memory_space<vmem>>, %arg8: memref<256x256xbf16, #tpu.memory_space<vmem>>, %arg9: memref<1x256xf32, #tpu.memory_space<vmem>>, %arg10: memref<1x256xf32, #tpu.memory_space<vmem>>, %arg11: memref<256x256xbf16, #tpu.memory_space<vmem>>, %arg12: memref<1x256xf32, #tpu.memory_space<vmem>>, %arg13: memref<1x2x256xf32, #tpu.memory_space<vmem>>, %arg14: memref<1x2x256xf32, #tpu.memory_space<vmem>>) attributes {dimension_semantics = [#tpu.dimension_semantics<parallel>], iteration_bounds = array<i64: 2>, scalar_prefetch = 0 : i64, scratch_operands = 0 : i64, tpu.core_type = #tpu.core_type<tc>, window_params = [{transform_indices = @transform_0, window_bounds = array<i64: 1, 2, 128>}, {pipeline_mode = #tpu.pipeline_mode<synchronous>, transform_indices = @transform_1, window_bounds = array<i64: 128, 128>}, {pipeline_mode = #tpu.pipeline_mode<synchronous>, transform_indices = @transform_2, window_bounds = array<i64: 1, 128>}, {pipeline_mode = #tpu.pipeline_mode<synchronous>, transform_indices = @transform_3, window_bounds = array<i64: 1, 128>}, {pipeline_mode = #tpu.pipeline_mode<synchronous>, transform_indices = @transform_4, window_bounds = array<i64: 128, 256>}, {pipeline_mode = #tpu.pipeline_mode<synchronous>, transform_indices = @transform_5, window_bounds = array<i64: 1, 256>}, {pipeline_mode = #tpu.pipeline_mode<synchronous>, transform_indices = @transform_6, window_bounds = array<i64: 1, 256>}, {pipeline_mode = #tpu.pipeline_mode<synchronous>, transform_indices = @transform_7, window_bounds = array<i64: 256, 256>}, {pipeline_mode = #tpu.pipeline_mode<synchronous>, transform_indices = @transform_8, window_bounds = array<i64: 1, 256>}, {pipeline_mode = #tpu.pipeline_mode<synchronous>, transform_indices = @transform_9, window_bounds = array<i64: 1, 256>}, {pipeline_mode = #tpu.pipeline_mode<synchronous>, transform_indices = @transform_10, window_bounds = array<i64: 256, 256>}, {pipeline_mode = #tpu.pipeline_mode<synchronous>, transform_indices = @transform_11, window_bounds = array<i64: 1, 256>}, {transform_indices = @transform_12, window_bounds = array<i64: 1, 2, 256>}, {transform_indices = @transform_13, window_bounds = array<i64: 1, 2, 256>}]} {
    %c0 = arith.constant 0 : index
    %c0_0 = arith.constant 0 : index
    %c0_1 = arith.constant 0 : index
    %0 = vector.load %arg1[%c0, %c0_0, %c0_1] : memref<1x2x128xf32, #tpu.memory_space<vmem>>, vector<1x2x128xf32>
    %1 = vector.shape_cast %0 : vector<1x2x128xf32> to vector<2x128xf32>
    %2 = arith.truncf %1 : vector<2x128xf32> to vector<2x128xbf16>
    %c0_2 = arith.constant 0 : index
    %c0_3 = arith.constant 0 : index
    %3 = vector.load %arg2[%c0_2, %c0_3] : memref<128x128xbf16, #tpu.memory_space<vmem>>, vector<128x128xbf16>
    %cst = arith.constant dense<0.000000e+00> : vector<2x128xf32>
    %4 = tpu.matmul %2, %3, %cst {dimension_numbers = #tpu.dot_dimension_numbers<[1], [0], [0], [1], [0, 0, 1, 1], [], []>} : vector<2x128xbf16>, vector<128x128xbf16>, vector<2x128xf32> -> vector<2x128xf32>
    %c0_4 = arith.constant 0 : index
    %c0_5 = arith.constant 0 : index
    %5 = vector.load %arg3[%c0_4, %c0_5] : memref<1x128xf32, #tpu.memory_space<vmem>>, vector<1x128xf32>
    %c0_6 = arith.constant 0 : index
    %c0_7 = arith.constant 0 : index
    %6 = vector.load %arg4[%c0_6, %c0_7] : memref<1x128xf32, #tpu.memory_space<vmem>>, vector<1x128xf32>
    %cst_8 = arith.constant dense<0.000000e+00> : vector<128xf32>
    %7 = vector.multi_reduction <add>, %4, %cst_8 [0] : vector<2x128xf32> to vector<128xf32>
    %8 = vector.shape_cast %7 : vector<128xf32> to vector<1x128xf32>
    %cst_9 = arith.constant 2.000000e+00 : f32
    %9 = vector.broadcast %cst_9 : f32 to vector<1x128xf32>
    %10 = arith.divf %8, %9 : vector<1x128xf32>
    %11 = vector.broadcast %10 : vector<1x128xf32> to vector<2x128xf32>
    %12 = arith.subf %4, %11 : vector<2x128xf32>
    %13 = arith.mulf %12, %12 : vector<2x128xf32>
    %cst_10 = arith.constant dense<0.000000e+00> : vector<128xf32>
    %14 = vector.multi_reduction <add>, %13, %cst_10 [0] : vector<2x128xf32> to vector<128xf32>
    %15 = vector.shape_cast %14 : vector<128xf32> to vector<1x128xf32>
    %cst_11 = arith.constant 2.000000e+00 : f32
    %16 = vector.broadcast %cst_11 : f32 to vector<1x128xf32>
    %17 = arith.divf %15, %16 : vector<1x128xf32>
    %cst_12 = arith.constant 9.99999974E-6 : f32
    %18 = vector.broadcast %cst_12 : f32 to vector<1x128xf32>
    %19 = arith.addf %17, %18 : vector<1x128xf32>
    %20 = math.rsqrt %19 : vector<1x128xf32>
    %21 = arith.mulf %20, %5 : vector<1x128xf32>
    %22 = vector.broadcast %21 : vector<1x128xf32> to vector<2x128xf32>
    %23 = arith.mulf %12, %22 : vector<2x128xf32>
    %24 = vector.broadcast %6 : vector<1x128xf32> to vector<2x128xf32>
    %25 = arith.addf %23, %24 : vector<2x128xf32>
    %cst_13 = arith.constant 0.000000e+00 : f32
    %26 = vector.broadcast %cst_13 : f32 to vector<2x128xf32>
    %27 = arith.maximumf %25, %26 : vector<2x128xf32>
    %28 = arith.truncf %27 : vector<2x128xf32> to vector<2x128xbf16>
    %c0_14 = arith.constant 0 : index
    %c0_15 = arith.constant 0 : index
    %29 = vector.load %arg5[%c0_14, %c0_15] : memref<128x256xbf16, #tpu.memory_space<vmem>>, vector<128x256xbf16>
    %cst_16 = arith.constant dense<0.000000e+00> : vector<2x256xf32>
    %30 = tpu.matmul %28, %29, %cst_16 {dimension_numbers = #tpu.dot_dimension_numbers<[1], [0], [0], [1], [0, 0, 1, 1], [], []>} : vector<2x128xbf16>, vector<128x256xbf16>, vector<2x256xf32> -> vector<2x256xf32>
    %c0_17 = arith.constant 0 : index
    %c0_18 = arith.constant 0 : index
    %31 = vector.load %arg6[%c0_17, %c0_18] : memref<1x256xf32, #tpu.memory_space<vmem>>, vector<1x256xf32>
    %c0_19 = arith.constant 0 : index
    %c0_20 = arith.constant 0 : index
    %32 = vector.load %arg7[%c0_19, %c0_20] : memref<1x256xf32, #tpu.memory_space<vmem>>, vector<1x256xf32>
    %cst_21 = arith.constant dense<0.000000e+00> : vector<256xf32>
    %33 = vector.multi_reduction <add>, %30, %cst_21 [0] : vector<2x256xf32> to vector<256xf32>
    %34 = vector.shape_cast %33 : vector<256xf32> to vector<1x256xf32>
    %cst_22 = arith.constant 2.000000e+00 : f32
    %35 = vector.broadcast %cst_22 : f32 to vector<1x256xf32>
    %36 = arith.divf %34, %35 : vector<1x256xf32>
    %37 = vector.broadcast %36 : vector<1x256xf32> to vector<2x256xf32>
    %38 = arith.subf %30, %37 : vector<2x256xf32>
    %39 = arith.mulf %38, %38 : vector<2x256xf32>
    %cst_23 = arith.constant dense<0.000000e+00> : vector<256xf32>
    %40 = vector.multi_reduction <add>, %39, %cst_23 [0] : vector<2x256xf32> to vector<256xf32>
    %41 = vector.shape_cast %40 : vector<256xf32> to vector<1x256xf32>
    %cst_24 = arith.constant 2.000000e+00 : f32
    %42 = vector.broadcast %cst_24 : f32 to vector<1x256xf32>
    %43 = arith.divf %41, %42 : vector<1x256xf32>
    %cst_25 = arith.constant 9.99999974E-6 : f32
    %44 = vector.broadcast %cst_25 : f32 to vector<1x256xf32>
    %45 = arith.addf %43, %44 : vector<1x256xf32>
    %46 = math.rsqrt %45 : vector<1x256xf32>
    %47 = arith.mulf %46, %31 : vector<1x256xf32>
    %48 = vector.broadcast %47 : vector<1x256xf32> to vector<2x256xf32>
    %49 = arith.mulf %38, %48 : vector<2x256xf32>
    %50 = vector.broadcast %32 : vector<1x256xf32> to vector<2x256xf32>
    %51 = arith.addf %49, %50 : vector<2x256xf32>
    %cst_26 = arith.constant 0.000000e+00 : f32
    %52 = vector.broadcast %cst_26 : f32 to vector<2x256xf32>
    %53 = arith.maximumf %51, %52 : vector<2x256xf32>
    %c0_27 = arith.constant 0 : index
    %c0_28 = arith.constant 0 : index
    %c0_29 = arith.constant 0 : index
    %54 = vector.load %arg13[%c0_27, %c0_28, %c0_29] : memref<1x2x256xf32, #tpu.memory_space<vmem>>, vector<1x2x256xf32>
    %55 = vector.shape_cast %54 : vector<1x2x256xf32> to vector<2x256xf32>
    %56 = vector.shape_cast %53 : vector<2x256xf32> to vector<1x2x256xf32>
    tpu.vector_store %arg13[%c0_27, %c0_28, %c0_29], %56 {strides = array<i32>} : memref<1x2x256xf32, #tpu.memory_space<vmem>>, vector<1x2x256xf32>,
    %57 = arith.truncf %53 : vector<2x256xf32> to vector<2x256xbf16>
    %c0_30 = arith.constant 0 : index
    %c0_31 = arith.constant 0 : index
    %58 = vector.load %arg8[%c0_30, %c0_31] : memref<256x256xbf16, #tpu.memory_space<vmem>>, vector<256x256xbf16>
    %cst_32 = arith.constant dense<0.000000e+00> : vector<2x256xf32>
    %59 = tpu.matmul %57, %58, %cst_32 {dimension_numbers = #tpu.dot_dimension_numbers<[1], [0], [0], [1], [0, 0, 1, 1], [], []>} : vector<2x256xbf16>, vector<256x256xbf16>, vector<2x256xf32> -> vector<2x256xf32>
    %c0_33 = arith.constant 0 : index
    %c0_34 = arith.constant 0 : index
    %60 = vector.load %arg9[%c0_33, %c0_34] : memref<1x256xf32, #tpu.memory_space<vmem>>, vector<1x256xf32>
    %c0_35 = arith.constant 0 : index
    %c0_36 = arith.constant 0 : index
    %61 = vector.load %arg10[%c0_35, %c0_36] : memref<1x256xf32, #tpu.memory_space<vmem>>, vector<1x256xf32>
    %cst_37 = arith.constant dense<0.000000e+00> : vector<256xf32>
    %62 = vector.multi_reduction <add>, %59, %cst_37 [0] : vector<2x256xf32> to vector<256xf32>
    %63 = vector.shape_cast %62 : vector<256xf32> to vector<1x256xf32>
    %cst_38 = arith.constant 2.000000e+00 : f32
    %64 = vector.broadcast %cst_38 : f32 to vector<1x256xf32>
    %65 = arith.divf %63, %64 : vector<1x256xf32>
    %66 = vector.broadcast %65 : vector<1x256xf32> to vector<2x256xf32>
    %67 = arith.subf %59, %66 : vector<2x256xf32>
    %68 = arith.mulf %67, %67 : vector<2x256xf32>
    %cst_39 = arith.constant dense<0.000000e+00> : vector<256xf32>
    %69 = vector.multi_reduction <add>, %68, %cst_39 [0] : vector<2x256xf32> to vector<256xf32>
    %70 = vector.shape_cast %69 : vector<256xf32> to vector<1x256xf32>
    %cst_40 = arith.constant 2.000000e+00 : f32
    %71 = vector.broadcast %cst_40 : f32 to vector<1x256xf32>
    %72 = arith.divf %70, %71 : vector<1x256xf32>
    %cst_41 = arith.constant 9.99999974E-6 : f32
    %73 = vector.broadcast %cst_41 : f32 to vector<1x256xf32>
    %74 = arith.addf %72, %73 : vector<1x256xf32>
    %75 = math.rsqrt %74 : vector<1x256xf32>
    %76 = arith.mulf %75, %60 : vector<1x256xf32>
    %77 = vector.broadcast %76 : vector<1x256xf32> to vector<2x256xf32>
    %78 = arith.mulf %67, %77 : vector<2x256xf32>
    %79 = vector.broadcast %61 : vector<1x256xf32> to vector<2x256xf32>
    %80 = arith.addf %78, %79 : vector<2x256xf32>
    %cst_42 = arith.constant 0.000000e+00 : f32
    %81 = vector.broadcast %cst_42 : f32 to vector<2x256xf32>
    %82 = arith.maximumf %80, %81 : vector<2x256xf32>
    %83 = arith.truncf %82 : vector<2x256xf32> to vector<2x256xbf16>
    %c0_43 = arith.constant 0 : index
    %c0_44 = arith.constant 0 : index
    %84 = vector.load %arg11[%c0_43, %c0_44] : memref<256x256xbf16, #tpu.memory_space<vmem>>, vector<256x256xbf16>
    %cst_45 = arith.constant dense<0.000000e+00> : vector<2x256xf32>
    %85 = tpu.matmul %83, %84, %cst_45 {dimension_numbers = #tpu.dot_dimension_numbers<[1], [0], [0], [1], [0, 0, 1, 1], [], []>} : vector<2x256xbf16>, vector<256x256xbf16>, vector<2x256xf32> -> vector<2x256xf32>
    %c0_46 = arith.constant 0 : index
    %c0_47 = arith.constant 0 : index
    %86 = vector.load %arg12[%c0_46, %c0_47] : memref<1x256xf32, #tpu.memory_space<vmem>>, vector<1x256xf32>
    %87 = vector.broadcast %86 : vector<1x256xf32> to vector<2x256xf32>
    %88 = arith.addf %85, %87 : vector<2x256xf32>
    %c0_48 = arith.constant 0 : index
    %c0_49 = arith.constant 0 : index
    %c0_50 = arith.constant 0 : index
    %89 = vector.load %arg14[%c0_48, %c0_49, %c0_50] : memref<1x2x256xf32, #tpu.memory_space<vmem>>, vector<1x2x256xf32>
    %90 = vector.shape_cast %89 : vector<1x2x256xf32> to vector<2x256xf32>
    %91 = vector.shape_cast %88 : vector<2x256xf32> to vector<1x2x256xf32>
    tpu.vector_store %arg14[%c0_48, %c0_49, %c0_50], %91 {strides = array<i32>} : memref<1x2x256xf32, #tpu.memory_space<vmem>>, vector<1x2x256xf32>,
    return
  }
  func.func @transform_0(%arg0: i32) -> (i32, i32, i32) {
    %c0_i32 = arith.constant 0 : i32
    %c0_i32_0 = arith.constant 0 : i32
    %c0_i32_1 = arith.constant 0 : i32
    return %arg0, %c0_i32, %c0_i32_0 : i32, i32, i32
  }
  func.func @transform_1(%arg0: i32) -> (i32, i32) {
    %c0_i32 = arith.constant 0 : i32
    %c0_i32_0 = arith.constant 0 : i32
    %c0_i32_1 = arith.constant 0 : i32
    return %c0_i32, %c0_i32_0 : i32, i32
  }
  func.func @transform_2(%arg0: i32) -> (i32, i32) {
    %c0_i32 = arith.constant 0 : i32
    %c0_i32_0 = arith.constant 0 : i32
    %c0_i32_1 = arith.constant 0 : i32
    return %c0_i32, %c0_i32_0 : i32, i32
  }
  func.func @transform_3(%arg0: i32) -> (i32, i32) {
    %c0_i32 = arith.constant 0 : i32
    %c0_i32_0 = arith.constant 0 : i32
    %c0_i32_1 = arith.constant 0 : i32
    return %c0_i32, %c0_i32_0 : i32, i32
  }
  func.func @transform_4(%arg0: i32) -> (i32, i32) {
    %c0_i32 = arith.constant 0 : i32
    %c0_i32_0 = arith.constant 0 : i32
    %c0_i32_1 = arith.constant 0 : i32
    return %c0_i32, %c0_i32_0 : i32, i32
  }
  func.func @transform_5(%arg0: i32) -> (i32, i32) {
    %c0_i32 = arith.constant 0 : i32
    %c0_i32_0 = arith.constant 0 : i32
    %c0_i32_1 = arith.constant 0 : i32
    return %c0_i32, %c0_i32_0 : i32, i32
  }
  func.func @transform_6(%arg0: i32) -> (i32, i32) {
    %c0_i32 = arith.constant 0 : i32
    %c0_i32_0 = arith.constant 0 : i32
    %c0_i32_1 = arith.constant 0 : i32
    return %c0_i32, %c0_i32_0 : i32, i32
  }
  func.func @transform_7(%arg0: i32) -> (i32, i32) {
    %c0_i32 = arith.constant 0 : i32
    %c0_i32_0 = arith.constant 0 : i32
    %c0_i32_1 = arith.constant 0 : i32
    return %c0_i32, %c0_i32_0 : i32, i32
  }
  func.func @transform_8(%arg0: i32) -> (i32, i32) {
    %c0_i32 = arith.constant 0 : i32
    %c0_i32_0 = arith.constant 0 : i32
    %c0_i32_1 = arith.constant 0 : i32
    return %c0_i32, %c0_i32_0 : i32, i32
  }
  func.func @transform_9(%arg0: i32) -> (i32, i32) {
    %c0_i32 = arith.constant 0 : i32
    %c0_i32_0 = arith.constant 0 : i32
    %c0_i32_1 = arith.constant 0 : i32
    return %c0_i32, %c0_i32_0 : i32, i32
  }
  func.func @transform_10(%arg0: i32) -> (i32, i32) {
    %c0_i32 = arith.constant 0 : i32
    %c0_i32_0 = arith.constant 0 : i32
    %c0_i32_1 = arith.constant 0 : i32
    return %c0_i32, %c0_i32_0 : i32, i32
  }
  func.func @transform_11(%arg0: i32) -> (i32, i32) {
    %c0_i32 = arith.constant 0 : i32
    %c0_i32_0 = arith.constant 0 : i32
    %c0_i32_1 = arith.constant 0 : i32
    return %c0_i32, %c0_i32_0 : i32, i32
  }
  func.func @transform_12(%arg0: i32) -> (i32, i32, i32) {
    %c0_i32 = arith.constant 0 : i32
    %c0_i32_0 = arith.constant 0 : i32
    %c0_i32_1 = arith.constant 0 : i32
    return %arg0, %c0_i32, %c0_i32_0 : i32, i32, i32
  }
  func.func @transform_13(%arg0: i32) -> (i32, i32, i32) {
    %c0_i32 = arith.constant 0 : i32
    %c0_i32_0 = arith.constant 0 : i32
    %c0_i32_1 = arith.constant 0 : i32
    return %arg0, %c0_i32, %c0_i32_0 : i32, i32, i32
  }
}

</mosaic_0001>

<bundles_post_ra>
// kernel: simsiam_forward.2
= control target key start
LH: loop header
LB: loop body
LE: loop exit
PB: predicated region body
PF: predicated region fallthrough
CT: control target
= control target key end

     0   :  { %s782_s9 = smov 0   ;;  %s784_s10 = smov 0   ;;  %s885_s0 = inlined_call_operand.vmem [shape: bf16[4,256,3], index: 0, kind: input, shape index: {}]   ;;  %s886_s1 = inlined_call_operand.vmem [shape: bf16[3,128], index: 1, kind: input, shape index: {}]   ;;  %s887_s2 = inlined_call_operand.vmem [shape: f32[4,1,128], index: 2, kind: output, shape index: {}]  }
   0x1   :  { %s786_s11 = smov 0  }
   0x2 LB: > { %s24_s12 = sadd.s32 1, %s760_s10  ;;  %p596_p0 = scmp.ge.s32.totalorder %s764_s11, 1  ;;  %s764_s11 = sphi %s786_s11, %s12_s11   ;;  %s760_s10 = sphi %s784_s10, %s889_s10   ;;  %s756_s9 = sphi %s782_s9, %s888_s9  }
   0x3   : > { %p26_p1 = scmp.ge.s32.totalorder %s24_s12, 4  ;;  %p131_p2 = scmp.lt.s32.totalorder %s764_s11, 5 }
   0x5   : > { %s891_s12 = smov (%p26_p1, %s24_s12), 0  ;;  %p132_p3 = pnand %p596_p0, %p131_p2 }
   0x6   : > { %p156_p4 = scmp.lt.s32.totalorder (!%p132_p3), %s756_s9, 3 }
   0x7   : > { %135 = sbr.rel (%p132_p3) target bundleno = 277 (0x115), region = 28 }
   0xc   : > { %v237_v0 = vld [vmem:[%s886_s1] sm:$0x3]  ;;  %vm336_vm0 = vcmask 1042432   ;;  %s893_s9 = smov (!%p156_p4, %s756_s9), 3  ;;  %vm239_vm1 = vcmask 23552  }
   0xd   : > { %v238_v1 = vunpack.c.l.bf16 %v237_v0  ;;  %s634_s15 = sshll.u32 %s893_s9, 7  ;;  %s867_s21 = scalar_lea.vmem %s887_s2, %s893_s9 }
   0xe   : > { %s809_s18 = scalar_lea.vmem %s885_s0, %s634_s15 }
   0xf   : > { %599 = vmatpush.msk.msra.mxu0 %vm336_vm0, %v238_v1  ;;  %714 = vmatpush.msk.msra.mxu1 %vm336_vm0, %v238_v1  ;;  %v636_v2 = vld [vmem:[%s809_s18] sm:$0xff]   ;;  %v699_v13 = vld [vmem:[%s809_s18 + $0x8] sm:$0xff]   ;;  %v700_v25 = vld [vmem:[%s809_s18 + $0x10] sm:$0xff]  }
  0x10   : > { %715 = vmatpush.msk.msra.mxu2 %vm336_vm0, %v238_v1  ;;  %716 = vmatpush.msk.msra.mxu3 %vm336_vm0, %v238_v1  ;;  %v702_v3 = vld [vmem:[%s809_s18 + $0x20] sm:$0xff]   ;;  %v637_v4 = vunpack.c.l.bf16 %v636_v2  ;;  %v638_v8 = vunpack.c.h.bf16 %v636_v2  ;;  %v703_v14 = vld [vmem:[%s809_s18 + $0x28] sm:$0xff]   ;;  %v641_v16 = vunpack.c.l.bf16 %v699_v13  ;;  %v642_v20 = vunpack.c.h.bf16 %v699_v13  ;;  %v704_v26 = vld [vmem:[%s809_s18 + $0x30] sm:$0xff]  }
  0x11   : > { %v653_v5 = vunpack.c.l.bf16 %v702_v3  ;;  %v706_v6 = vld [vmem:[%s809_s18 + $0x40] sm:$0xff]   ;;  %v654_v9 = vunpack.c.h.bf16 %v702_v3  ;;  %v707_v15 = vld [vmem:[%s809_s18 + $0x48] sm:$0xff]   ;;  %v657_v17 = vunpack.c.l.bf16 %v703_v14  ;;  %v658_v21 = vunpack.c.h.bf16 %v703_v14  ;;  %v708_v27 = vld [vmem:[%s809_s18 + $0x50] sm:$0xff]  }
  0x12   : > { %v669_v7 = vunpack.c.l.bf16 %v706_v6  ;;  %600 = vmatmul.msk.f32.vlgmr.msra.gmra.mxu0 %vm239_vm1, %v637_v4  ;;  %v670_v10 = vunpack.c.h.bf16 %v706_v6  ;;  %v710_v11 = vld [vmem:[%s809_s18 + $0x60] sm:$0xff]   ;;  %v673_v18 = vunpack.c.l.bf16 %v707_v15  ;;  %v674_v22 = vunpack.c.h.bf16 %v707_v15  ;;  %v711_v23 = vld [vmem:[%s809_s18 + $0x68] sm:$0xff]   ;;  %v712_v32 = vld [vmem:[%s809_s18 + $0x70] sm:$0xff]  }
  0x13   : > { %608 = vmatmul.msk.f32.vlgmr.msra.gmra.mxu1 %vm239_vm1, %v653_v5  ;;  %v685_v12 = vunpack.c.l.bf16 %v710_v11  ;;  %v686_v19 = vunpack.c.h.bf16 %v710_v11  ;;  %v689_v24 = vunpack.c.l.bf16 %v711_v23  ;;  %v645_v28 = vunpack.c.l.bf16 %v700_v25  ;;  %v701_v37 = vld [vmem:[%s809_s18 + $0x18] sm:$0xff]  }
  0x14   : > { %616 = vmatmul.msk.f32.vlgmr.msra.gmra.mxu2 %vm239_vm1, %v669_v7  ;;  %v661_v29 = vunpack.c.l.bf16 %v704_v26  ;;  %v677_v30 = vunpack.c.l.bf16 %v708_v27  ;;  %v690_v31 = vunpack.c.h.bf16 %v711_v23  ;;  %v646_v33 = vunpack.c.h.bf16 %v700_v25  ;;  %v705_v38 = vld [vmem:[%s809_s18 + $0x38] sm:$0xff]  }
  0x15   : > { %624 = vmatmul.msk.f32.vlgmr.msra.gmra.mxu3 %vm239_vm1, %v685_v12  ;;  %v662_v34 = vunpack.c.h.bf16 %v704_v26  ;;  %v678_v35 = vunpack.c.h.bf16 %v708_v27  ;;  %v693_v36 = vunpack.c.l.bf16 %v712_v32  ;;  %v709_v39 = vld [vmem:[%s809_s18 + $0x58] sm:$0xff]   ;;  %v649_v40 = vunpack.c.l.bf16 %v701_v37 }
  0x16   : > { %v665_v41 = vunpack.c.l.bf16 %v705_v38  ;;  %v681_v42 = vunpack.c.l.bf16 %v709_v39  ;;  %v694_v43 = vunpack.c.h.bf16 %v712_v32  ;;  %v713_v44 = vld [vmem:[%s809_s18 + $0x78] sm:$0xff]   ;;  %v650_v45 = vunpack.c.h.bf16 %v701_v37 }
  0x17   : > { %v666_v46 = vunpack.c.h.bf16 %v705_v38  ;;  %v682_v47 = vunpack.c.h.bf16 %v709_v39  ;;  %v697_v48 = vunpack.c.l.bf16 %v713_v44  ;;  %v698_v49 = vunpack.c.h.bf16 %v713_v44 }
  0x18   : > { %v766_v44 = vmov 0.0  }
  0x19   : > { %172 = vst [vmem:[%s867_s21] sm:$0x1] %v766_v44 }
  0x1a   : > { %601 = vmatmul.msk.f32.gmra.mxu0 %vm239_vm1, %v638_v8 }
  0x1b   : > { %609 = vmatmul.msk.f32.gmra.mxu1 %vm239_vm1, %v654_v9 }
  0x1c   : > { %617 = vmatmul.msk.f32.gmra.mxu2 %vm239_vm1, %v670_v10 }
  0x1d   : > { %625 = vmatmul.msk.f32.gmra.mxu3 %vm239_vm1, %v686_v19 }
  0x22   : > { %602 = vmatmul.msk.f32.gmra.mxu0 %vm239_vm1, %v641_v16 }
  0x23   : > { %610 = vmatmul.msk.f32.gmra.mxu1 %vm239_vm1, %v657_v17 }
  0x24   : > { %618 = vmatmul.msk.f32.gmra.mxu2 %vm239_vm1, %v673_v18 }
  0x25   : > { %626 = vmatmul.msk.f32.gmra.mxu3 %vm239_vm1, %v689_v24 }
  0x2a   : > { %603 = vmatmul.msk.f32.gmra.mxu0 %vm239_vm1, %v642_v20 }
  0x2b   : > { %611 = vmatmul.msk.f32.gmra.mxu1 %vm239_vm1, %v658_v21 }
  0x2c   : > { %619 = vmatmul.msk.f32.gmra.mxu2 %vm239_vm1, %v674_v22 }
  0x2d   : > { %627 = vmatmul.msk.f32.gmra.mxu3 %vm239_vm1, %v690_v31 }
  0x32   : > { %604 = vmatmul.msk.f32.gmra.mxu0 %vm239_vm1, %v645_v28 }
  0x33   : > { %612 = vmatmul.msk.f32.gmra.mxu1 %vm239_vm1, %v661_v29 }
  0x34   : > { %620 = vmatmul.msk.f32.gmra.mxu2 %vm239_vm1, %v677_v30 }
  0x35   : > { %628 = vmatmul.msk.f32.gmra.mxu3 %vm239_vm1, %v693_v36 }
  0x3a   : > { %605 = vmatmul.msk.f32.gmra.mxu0 %vm239_vm1, %v646_v33 }
  0x3b   : > { %613 = vmatmul.msk.f32.gmra.mxu1 %vm239_vm1, %v662_v34 }
  0x3c   : > { %621 = vmatmul.msk.f32.gmra.mxu2 %vm239_vm1, %v678_v35 }
  0x3d   : > { %629 = vmatmul.msk.f32.gmra.mxu3 %vm239_vm1, %v694_v43 }
  0x42   : > { %606 = vmatmul.msk.f32.gmra.mxu0 %vm239_vm1, %v649_v40 }
  0x43   : > { %614 = vmatmul.msk.f32.gmra.mxu1 %vm239_vm1, %v665_v41 }
  0x44   : > { %622 = vmatmul.msk.f32.gmra.mxu2 %vm239_vm1, %v681_v42 }
  0x45   : > { %630 = vmatmul.msk.f32.gmra.mxu3 %vm239_vm1, %v697_v48 }
  0x4a   : > { %607 = vmatmul.msk.f32.gmra.mxu0 %vm239_vm1, %v650_v45 }
  0x4b   : > { %615 = vmatmul.msk.f32.gmra.mxu1 %vm239_vm1, %v666_v46 }
  0x4c   : > { %623 = vmatmul.msk.f32.gmra.mxu2 %vm239_vm1, %v682_v47 }
  0x4d   : > { %631 = vmatmul.msk.f32.gmra.mxu3 %vm239_vm1, %v698_v49 }
  0x8f   : > { %v357_v50 = vpop.f32.mrf.mxu0 }
  0x90   : > { %v381_v51 = vpop.f32.mrf.mxu1  ;;  %v454_v4 = vmax.f32 %v357_v50, 0.0 }
  0x91   : > { %v462_v23 = vmax.f32 %v381_v51, 0.0 }
  0x97   : > { %v360_v52 = vpop.f32.mrf.mxu0  ;;  %v405_v54 = vpop.f32.mrf.mxu2 }
  0x98   : > { %v384_v53 = vpop.f32.mrf.mxu1  ;;  %v859_v60 = vpop.f32.mrf.mxu3  ;;  %v455_v2 = vmax.f32 %v360_v52, 0.0  ;;  %v470_v45 = vmax.f32 %v405_v54, 0.0 }
  0x99   : > { %v463_v26 = vmax.f32 %v384_v53, 0.0  ;;  %v478_v54 = vmax.f32 %v859_v60, 0.0 }
  0x9a   : > { %v486_v6 = vadd.f32 %v455_v2, %v454_v4 }
  0x9f   : > { %v363_v55 = vpop.f32.mrf.mxu0  ;;  %v408_v58 = vpop.f32.mrf.mxu2 }
  0xa0   : > { %v387_v56 = vpop.f32.mrf.mxu1  ;;  %v861_v1 = vpop.f32.mrf.mxu3  ;;  %v456_v5 = vmax.f32 %v363_v55, 0.0  ;;  %v471_v47 = vmax.f32 %v408_v58, 0.0 }
  0xa1   : > { %v464_v28 = vmax.f32 %v387_v56, 0.0  ;;  %v479_v58 = vmax.f32 %v861_v1, 0.0 }
  0xa2   : > { %v487_v10 = vadd.f32 %v486_v6, %v456_v5 }
  0xa7   : > { %v366_v57 = vpop.f32.mrf.mxu0  ;;  %v411_v62 = vpop.f32.mrf.mxu2 }
  0xa8   : > { %v390_v59 = vpop.f32.mrf.mxu1  ;;  %v457_v7 = vmax.f32 %v366_v57, 0.0  ;;  %v435_v12 = vpop.f32.mrf.mxu3  ;;  %v472_v49 = vmax.f32 %v411_v62, 0.0 }
  0xa9   : > { %v465_v31 = vmax.f32 %v390_v59, 0.0 }
  0xaa   : > { %v488_v13 = vadd.f32 %v487_v10, %v457_v7  ;;  %v480_v7 = vmax.f32 %v435_v12, 0.0 }
  0xaf   : > { %v369_v61 = vpop.f32.mrf.mxu0  ;;  %v414_v3 = vpop.f32.mrf.mxu2 }
  0xb0   : > { %v393_v63 = vpop.f32.mrf.mxu1  ;;  %v458_v11 = vmax.f32 %v369_v61, 0.0  ;;  %v438_v25 = vpop.f32.mrf.mxu3  ;;  %v473_v52 = vmax.f32 %v414_v3, 0.0 }
  0xb1   : > { %v466_v33 = vmax.f32 %v393_v63, 0.0  ;;  %v481_v3 = vmax.f32 %v438_v25, 0.0 }
  0xb2   : > { %v489_v15 = vadd.f32 %v488_v13, %v458_v11 }
  0xb7   : > { %v372_v0 = vpop.f32.mrf.mxu0  ;;  %v417_v17 = vpop.f32.mrf.mxu2 }
  0xb8   : > { %v396_v9 = vpop.f32.mrf.mxu1  ;;  %v459_v14 = vmax.f32 %v372_v0, 0.0  ;;  %v441_v38 = vpop.f32.mrf.mxu3  ;;  %v474_v55 = vmax.f32 %v417_v17, 0.0 }
  0xb9   : > { %v467_v36 = vmax.f32 %v396_v9, 0.0  ;;  %v482_v10 = vmax.f32 %v441_v38, 0.0 }
  0xba   : > { %v490_v18 = vadd.f32 %v489_v15, %v459_v14 }
  0xbf   : > { %v375_v8 = vpop.f32.mrf.mxu0  ;;  %v420_v30 = vpop.f32.mrf.mxu2 }
  0xc0   : > { %v460_v16 = vmax.f32 %v375_v8, 0.0  ;;  %v399_v22 = vpop.f32.mrf.mxu1  ;;  %v444_v51 = vpop.f32.mrf.mxu3  ;;  %v475_v59 = vmax.f32 %v420_v30, 0.0 }
  0xc1   : > { %v468_v40 = vmax.f32 %v399_v22, 0.0  ;;  %v483_v14 = vmax.f32 %v444_v51, 0.0 }
  0xc2   : > { %v491_v20 = vadd.f32 %v490_v18, %v460_v16 }
  0xc7   : > { %v378_v19 = vpop.f32.mrf.mxu0  ;;  %v423_v43 = vpop.f32.mrf.mxu2 }
  0xc8   : > { %v461_v21 = vmax.f32 %v378_v19, 0.0  ;;  %v402_v35 = vpop.f32.mrf.mxu1  ;;  %v476_v0 = vmax.f32 %v423_v43, 0.0  ;;  %v447_v5 = vpop.f32.mrf.mxu3 }
  0xc9   : > { %v469_v41 = vmax.f32 %v402_v35, 0.0  ;;  %v484_v17 = vmax.f32 %v447_v5, 0.0 }
  0xca   : > { %v492_v24 = vadd.f32 %v491_v20, %v461_v21 }
  0xcc   : > { %v493_v27 = vadd.f32 %v492_v24, %v462_v23  ;;  %v453_v23 = vld [vmem:[%s867_s21] sm:$0x1] }
  0xce   : > { %v494_v29 = vadd.f32 %v493_v27, %v463_v26 }
  0xcf   : > { %v426_v57 = vpop.f32.mrf.mxu2 }
  0xd0   : > { %v495_v32 = vadd.f32 %v494_v29, %v464_v28  ;;  %v477_v2 = vmax.f32 %v426_v57, 0.0  ;;  %v450_v13 = vpop.f32.mrf.mxu3 }
  0xd1   : > { %v485_v60 = vmax.f32 %v450_v13, 0.0 }
  0xd2   : > { %v496_v34 = vadd.f32 %v495_v32, %v465_v31 }
  0xd4   : > { %v497_v37 = vadd.f32 %v496_v34, %v466_v33 }
  0xd6   : > { %v498_v39 = vadd.f32 %v497_v37, %v467_v36 }
  0xd8   : > { %v499_v42 = vadd.f32 %v498_v39, %v468_v40 }
  0xda   : > { %v500_v46 = vadd.f32 %v499_v42, %v469_v41 }
  0xdc   : > { %v501_v48 = vadd.f32 %v500_v46, %v470_v45 }
  0xde   : > { %v502_v50 = vadd.f32 %v501_v48, %v471_v47 }
  0xe0   : > { %v503_v53 = vadd.f32 %v502_v50, %v472_v49 }
  0xe2   : > { %v504_v56 = vadd.f32 %v503_v53, %v473_v52 }
  0xe4   : > { %v505_v61 = vadd.f32 %v504_v56, %v474_v55 }
  0xe6   : > { %v506_v63 = vadd.f32 %v505_v61, %v475_v59 }
  0xe8   : > { %v507_v4 = vadd.f32 %v506_v63, %v476_v0 }
  0xea   : > { %v508_v6 = vadd.f32 %v507_v4, %v477_v2 }
  0xec   : > { %v509_v62 = vadd.f32 %v508_v6, %v478_v54 }
  0xee   : > { %v510_v8 = vadd.f32 %v509_v62, %v479_v58 }
  0xf0   : > { %v511_v9 = vadd.f32 %v510_v8, %v480_v7 }
  0xf2   : > { %v512_v11 = vadd.f32 %v511_v9, %v481_v3 }
  0xf4   : > { %v513_v15 = vadd.f32 %v512_v11, %v482_v10 }
  0xf6   : > { %v514_v16 = vadd.f32 %v513_v15, %v483_v14 }
  0xf8   : > { %v515_v18 = vadd.f32 %v514_v16, %v484_v17 }
  0xfa   : > { %v516_v19 = vadd.f32 %v515_v18, %v485_v60 }
  0xfc   : > { %v517_v1 = vrot.slane %v516_v19, 4 }
  0xfe   : > { %v518_v20 = vadd.f32 %v517_v1, %v516_v19 }
 0x100   : > { %v519_v12 = vrot.slane %v518_v20, 2 }
 0x102   : > { %v520_v21 = vadd.f32 %v519_v12, %v518_v20 }
 0x104   : > { %v521_v22 = vrot.slane %v520_v21, 1 }
 0x106   : > { %v522_v24 = vadd.f32 %v521_v22, %v520_v21 }
 0x108   : > { %v523_v25 = vadd.f32 %v522_v24, %v453_v23 }
 0x10a   : > { %524 = vst [vmem:[%s867_s21] sm:$0x1] %v523_v25 }
 0x111   : > { %v528_v26 = vld [vmem:[%s867_s21] sm:$0x1] }
 0x112   : > { %v529_v27 = vmul.f32 0.00390625, %v528_v26 }
 0x114   : > { %530 = vst [vmem:[%s867_s21] sm:$0x1] %v529_v27 }
 0x115 PF: > { %s12_s11 = sadd.s32 1, %s764_s11   ;;  %s888_s9 = smov %s760_s10 }
 0x116   : > { %p9_p5 = scmp.ge.s32.totalorder %s12_s11, 6   ;;  %s889_s10 = smov %s891_s12 }
 0x118   :  { %11 = sbr.rel (!%p9_p5) target bundleno = 2 (0x2), region = 66 }

// kernel: simsiam_forward.3
= control target key start
LH: loop header
LB: loop body
LE: loop exit
PB: predicated region body
PF: predicated region fallthrough
CT: control target
= control target key end

     0   :  { %s2013_s25 = smov 0   ;;  %s2626_s0 = inlined_call_operand.vmem [shape: f32[2,2,128], index: 0, kind: input, shape index: {}]   ;;  %s2627_s1 = inlined_call_operand.vmem [shape: bf16[128,128], index: 1, kind: input, shape index: {}]   ;;  %s2628_s2 = inlined_call_operand.vmem [shape: f32[1,128], index: 2, kind: input, shape index: {}]   ;;  %s2629_s3 = inlined_call_operand.vmem [shape: f32[1,128], index: 3, kind: input, shape index: {}]   ;;  %s2630_s4 = inlined_call_operand.vmem [shape: bf16[128,256], index: 4, kind: input, shape index: {}]   ;;  %s2631_s5 = inlined_call_operand.vmem [shape: f32[1,256], index: 5, kind: input, shape index: {}]   ;;  %s2632_s6 = inlined_call_operand.vmem [shape: f32[1,256], index: 6, kind: input, shape index: {}]   ;;  %s2633_s7 = inlined_call_operand.vmem [shape: bf16[256,256], index: 7, kind: input, shape index: {}]   ;;  %s2634_s8 = inlined_call_operand.vmem [shape: f32[1,256], index: 8, kind: input, shape index: {}]   ;;  %s2635_s9 = inlined_call_operand.vmem [shape: f32[1,256], index: 9, kind: input, shape index: {}]   ;;  %s2636_s10 = inlined_call_operand.vmem [shape: bf16[256,256], index: 10, kind: input, shape index: {}]   ;;  %s2637_s11 = inlined_call_operand.vmem [shape: f32[1,256], index: 11, kind: input, shape index: {}]   ;;  %s2638_s12 = inlined_call_operand.vmem [shape: f32[2,2,256], index: 12, kind: output, shape index: {0}]   ;;  %s2639_s13 = inlined_call_operand.vmem [shape: f32[2,2,256], index: 13, kind: output, shape index: {1}]  }
   0x1 LB: > { %s1458_s26 = sadd.s32 4294967295, %s1940_s25   ;;  %p1462_p0 = scmp.ge.s32.totalorder %s1940_s25, 1  ;;  %s1940_s25 = sphi %s2013_s25, %s24_s25  }
   0x2   : > { %p389_p1 = scmp.lt.s32.totalorder %s1940_s25, 3 }
   0x4   : > { %p390_p2 = pnand %p1462_p0, %p389_p1 }
   0x5   : > { %p437_p3 = scmp.lt.s32.totalorder (!%p390_p2), %s1458_s26, 1 }
   0x6   : > { %393 = sbr.rel (%p390_p2) target bundleno = 773 (0x305), region = 68 }
   0xb   : > { %v1831_v0 = vld [vmem:[%s2627_s1 + $0x38] sm:$0xff]  ;;  %v1830_v1 = vld [vmem:[%s2627_s1 + $0x30] sm:$0xff]  ;;  %v1829_v2 = vld [vmem:[%s2627_s1 + $0x28] sm:$0xff]  ;;  %s2641_s26 = smov (!%p437_p3, %s1458_s26), 1  ;;  %v1942_v10 = vmov 2.0   ;;  %vm532_vm0 = vcmask 1041408  }
   0xc   : > { %517 = vmatpush.bf16.msra.mxu0 %v1831_v0  ;;  %v1828_v3 = vld [vmem:[%s2627_s1 + $0x20] sm:$0xff]  ;;  %v1827_v4 = vld [vmem:[%s2627_s1 + $0x18] sm:$0xff]  ;;  %v1826_v5 = vld [vmem:[%s2627_s1 + $0x10] sm:$0xff]  ;;  %s1463_s22 = sshll.u32 %s2641_s26, 1  ;;  %1922 = vrcp.f32 %v1942_v10  ;;  %s1822_s20 = sshll.u32 %s2641_s26, 2 }
   0xd   : > { %v1825_v6 = vld [vmem:[%s2627_s1 + $0x8] sm:$0xff]  ;;  %s440_s29 = scalar_lea.vmem %s2626_s0, %s1463_s22  ;;  %v1824_v7 = vld [vmem:[%s2627_s1] sm:$0xff]  ;;  %v1558_v16 = vld [vmem:[%s2630_s4 + $0x70] sm:$0xf]  ;;  %s445_s23 = scalar_lea.vmem %s2638_s12, %s1822_s20 }
   0xe   : > { %v451_v8 = vld [vmem:[%s440_s29] sm:$0x3]  ;;  %v1847_v17 = vld [vmem:[%s2630_s4 + $0x74] sm:$0xf0]  ;;  %v1846_v20 = vld [vmem:[%s2630_s4 + $0x74] sm:$0xf]  ;;  %s450_s19 = scalar_lea.vmem %s2639_s13, %s1822_s20 }
   0xf   : > { %v452_v9 = vpack.c.bf16 %v451_v8, %v451_v8  ;;  %v1559_v19 = vor.u32 %v1847_v17, %v1558_v16  ;;  %v1560_v21 = vld [vmem:[%s2630_s4 + $0x78] sm:$0xf0]  ;;  %v1550_v25 = vld [vmem:[%s2630_s4 + $0x60] sm:$0xf]  ;;  %v1845_v26 = vld [vmem:[%s2630_s4 + $0x64] sm:$0xf0] }
  0x10   : > { %518 = vmatpush.bf16.msra.mxu0 %v1830_v1  ;;  %v1563_v23 = vor.u32 %v1846_v20, %v1560_v21  ;;  %v1844_v27 = vld [vmem:[%s2630_s4 + $0x64] sm:$0xf]  ;;  %v1551_v29 = vor.u32 %v1845_v26, %v1550_v25  ;;  %v1552_v30 = vld [vmem:[%s2630_s4 + $0x68] sm:$0xf0]  ;;  %v1542_v35 = vld [vmem:[%s2630_s4 + $0x50] sm:$0xf] }
  0x11   : > { %674 = vmatpush.bf16.msra.mxu1 %v1559_v19  ;;  %v1555_v32 = vor.u32 %v1844_v27, %v1552_v30  ;;  %v1843_v36 = vld [vmem:[%s2630_s4 + $0x54] sm:$0xf0]  ;;  %v1842_v37 = vld [vmem:[%s2630_s4 + $0x54] sm:$0xf]  ;;  %v1544_v40 = vld [vmem:[%s2630_s4 + $0x58] sm:$0xf0] }
  0x12   : > { %v1923_v11 = vpop.eup %1922  ;;  %687 = vmatpush.bf16.msra.mxu2 %v1563_v23  ;;  %v1543_v39 = vor.u32 %v1843_v36, %v1542_v35  ;;  %v1547_v42 = vor.u32 %v1842_v37, %v1544_v40  ;;  %v1534_v44 = vld [vmem:[%s2630_s4 + $0x40] sm:$0xf]  ;;  %v1841_v45 = vld [vmem:[%s2630_s4 + $0x44] sm:$0xf0]  ;;  %v1840_v46 = vld [vmem:[%s2630_s4 + $0x44] sm:$0xf] }
  0x13   : > { %v541_v12 = vmul.f32 2.0, %v1923_v11  ;;  %vm545_vm1 = vweird.f32 %v1923_v11  ;;  %v1535_v48 = vor.u32 %v1841_v45, %v1534_v44  ;;  %v1536_v49 = vld [vmem:[%s2630_s4 + $0x48] sm:$0xf0]  ;;  %v1526_v52 = vld [vmem:[%s2630_s4 + $0x30] sm:$0xf] }
  0x14   : > { %519 = vmatpush.bf16.msra.mxu0 %v1829_v2  ;;  %v1539_v50 = vor.u32 %v1840_v46, %v1536_v49  ;;  %v1839_v53 = vld [vmem:[%s2630_s4 + $0x34] sm:$0xf0]  ;;  %v1838_v54 = vld [vmem:[%s2630_s4 + $0x34] sm:$0xf]  ;;  %v1528_v57 = vld [vmem:[%s2630_s4 + $0x38] sm:$0xf0] }
  0x15   : > { %v542_v13 = vsub.f32 1.0, %v541_v12  ;;  %675 = vmatpush.bf16.msra.mxu1 %v1551_v29  ;;  %v1527_v56 = vor.u32 %v1839_v53, %v1526_v52  ;;  %v1531_v58 = vor.u32 %v1838_v54, %v1528_v57  ;;  %v1518_v61 = vld [vmem:[%s2630_s4 + $0x20] sm:$0xf]  ;;  %v1837_v62 = vld [vmem:[%s2630_s4 + $0x24] sm:$0xf0] }
  0x16   : > { %688 = vmatpush.bf16.msra.mxu2 %v1555_v32  ;;  %v1519_v63 = vor.u32 %v1837_v62, %v1518_v61  ;;  %v1836_v0 = vld [vmem:[%s2630_s4 + $0x24] sm:$0xf]  ;;  %v1520_v1 = vld [vmem:[%s2630_s4 + $0x28] sm:$0xf0]  ;;  %v1834_v8 = vld [vmem:[%s2630_s4 + $0x14] sm:$0xf] }
  0x17   : > { %v543_v22 = vmul.f32 %v1923_v11, %v542_v13  ;;  %v1502_v12 = vld [vmem:[%s2630_s4] sm:$0xf]  ;;  %v1833_v13 = vld [vmem:[%s2630_s4 + $0x4] sm:$0xf0]  ;;  %v1504_v16 = vld [vmem:[%s2630_s4 + $0x8] sm:$0xf0] }
  0x18   : > { %520 = vmatpush.bf16.msra.mxu0 %v1828_v3  ;;  %v1523_v3 = vor.u32 %v1836_v0, %v1520_v1  ;;  %v530_v27 = vld [vmem:[%s2628_s2] sm:$0x1]  ;;  %v1863_v40 = vld [vmem:[%s2633_s7 + $0x74] sm:$0xf0]  ;;  %v1862_v44 = vld [vmem:[%s2633_s7 + $0x74] sm:$0xf] }
  0x19   : > { %v544_v31 = vadd.f32 %v1923_v11, %v543_v22  ;;  %676 = vmatpush.bf16.msra.mxu1 %v1543_v39  ;;  %v1921_v32 = vld [vmem:[%s2629_s3] ss:$0 sm:$0xff]  ;;  %v1622_v39 = vld [vmem:[%s2633_s7 + $0x70] sm:$0xf]  ;;  %v1624_v45 = vld [vmem:[%s2633_s7 + $0x78] sm:$0xf0] }
  0x1a   : > { %689 = vmatpush.bf16.msra.mxu2 %v1547_v42  ;;  %v1627_v46 = vor.u32 %v1862_v44, %v1624_v45  ;;  %v1861_v49 = vld [vmem:[%s2633_s7 + $0x64] sm:$0xf0]  ;;  %v1616_v54 = vld [vmem:[%s2633_s7 + $0x68] sm:$0xf0]  ;;  %v1686_v57 = vld [vmem:[%s2633_s7 + $0xf0] sm:$0xf] }
  0x1b   : > { %v2088_v41 = vsel %vm545_vm1, %v1923_v11, %v544_v31  ;;  %v1688_v0 = vld [vmem:[%s2633_s7 + $0xf8] sm:$0xf0]  ;;  %v1662_v44 = vld [vmem:[%s2633_s7 + $0xc0] sm:$0xf]  ;;  %v1873_v45 = vld [vmem:[%s2633_s7 + $0xc4] sm:$0xf0] }
  0x1c   : > { %521 = vmatpush.bf16.msra.mxu0 %v1827_v4 }
  0x1d   : > { %677 = vmatpush.bf16.msra.mxu1 %v1535_v48  ;;  %v1614_v48 = vld [vmem:[%s2633_s7 + $0x60] sm:$0xf] }
  0x1e   : > { %690 = vmatpush.bf16.msra.mxu2 %v1539_v50  ;;  %v1860_v50 = vld [vmem:[%s2633_s7 + $0x64] sm:$0xf]  ;;  %v1615_v53 = vor.u32 %v1861_v49, %v1614_v48  ;;  %v1663_v49 = vor.u32 %v1873_v45, %v1662_v44  ;;  %v1632_v45 = vld [vmem:[%s2633_s7 + $0x88] sm:$0xf0] }
  0x1f   : > { %v1864_v44 = vld [vmem:[%s2633_s7 + $0x84] sm:$0xf] }
  0x20   : > { %522 = vmatpush.bf16.msra.mxu0 %v1826_v5  ;;  %v1510_v5 = vld [vmem:[%s2630_s4 + $0x10] sm:$0xf] }
  0x21   : > { %678 = vmatpush.bf16.msra.mxu1 %v1527_v56  ;;  %v1619_v56 = vor.u32 %v1860_v50, %v1616_v54  ;;  %v1664_v50 = vld [vmem:[%s2633_s7 + $0xc8] sm:$0xf0]  ;;  %v1582_v54 = vld [vmem:[%s2633_s7 + $0x20] sm:$0xf] }
  0x22   : > { %691 = vmatpush.bf16.msra.mxu2 %v1531_v58  ;;  %v1879_v58 = vld [vmem:[%s2633_s7 + $0xf4] sm:$0xf0] }
  0x23   : > { %v1687_v62 = vor.u32 %v1879_v58, %v1686_v57  ;;  %v1852_v58 = vld [vmem:[%s2633_s7 + $0x24] sm:$0xf] }
  0x24   : > { %523 = vmatpush.bf16.msra.mxu0 %v1825_v6  ;;  %v1835_v6 = vld [vmem:[%s2630_s4 + $0x14] sm:$0xf0] }
  0x25   : > { %679 = vmatpush.bf16.msra.mxu1 %v1519_v63  ;;  %v1878_v63 = vld [vmem:[%s2633_s7 + $0xf4] sm:$0xf] }
  0x26   : > { %692 = vmatpush.bf16.msra.mxu2 %v1523_v3  ;;  %v1691_v1 = vor.u32 %v1878_v63, %v1688_v0  ;;  %v1859_v3 = vld [vmem:[%s2633_s7 + $0x54] sm:$0xf0]  ;;  %v1870_v63 = vld [vmem:[%s2633_s7 + $0xb4] sm:$0xf] }
  0x28   : > { %524 = vmatpush.bf16.msra.mxu0 %v1824_v7  ;;  %v1511_v7 = vor.u32 %v1835_v6, %v1510_v5 }
  0x2a   : > { %680 = vmatpush.bf16.msra.mxu1 %v1511_v7 }
  0x2b   : > { %525 = vmatmul.bf16.vlgmr.msra.gmra.mxu0 %v452_v9  ;;  %v1512_v9 = vld [vmem:[%s2630_s4 + $0x18] sm:$0xf0] }
  0x2c   : > { %v1515_v11 = vor.u32 %v1834_v8, %v1512_v9  ;;  %993 = vmatpush.bf16.msrb.mxu0 %v1687_v62  ;;  %v1608_v8 = vld [vmem:[%s2633_s7 + $0x58] sm:$0xf0]  ;;  %v1654_v62 = vld [vmem:[%s2633_s7 + $0xb0] sm:$0xf] }
  0x2e   : > { %693 = vmatpush.bf16.msra.mxu2 %v1515_v11  ;;  %v1877_v11 = vld [vmem:[%s2633_s7 + $0xe4] sm:$0xf0] }
  0xa8   : > { %v526_v14 = vpop.f32.mrf.mxu0 }
  0xa9   : > { %v533_v15 = vsel %vm532_vm0, %v526_v14, 0.0 }
  0xaa   : > { %v534_v18 = vrot.slane %v533_v15, 4 }
  0xac   : > { %v535_v24 = vadd.f32 %v534_v18, %v533_v15  ;;  %v1503_v15 = vor.u32 %v1833_v13, %v1502_v12  ;;  %v1876_v12 = vld [vmem:[%s2633_s7 + $0xe4] sm:$0xf] }
  0xae   : > { %v536_v28 = vrot.slane %v535_v24, 2  ;;  %681 = vmatpush.bf16.msra.mxu1 %v1503_v15 }
  0xb0   : > { %v537_v33 = vadd.f32 %v536_v28, %v535_v24  ;;  %v528_v34 = vpop.f32.mrf.mxu0 }
  0xb2   : > { %v538_v38 = vrot.slane %v537_v33, 1  ;;  %1006 = vmatpush.bf16.msrb.mxu1 %v1627_v46  ;;  %v1872_v46 = vld [vmem:[%s2633_s7 + $0xc4] sm:$0xf] }
  0xb4   : > { %v539_v43 = vadd.f32 %v538_v38, %v537_v33 }
  0xb6   : > { %v547_v47 = vmul.f32 %v2088_v41, %v539_v43  ;;  %v1623_v43 = vor.u32 %v1863_v40, %v1622_v39  ;;  %1007 = vmatpush.bf16.msrb.mxu1 %v1619_v56 }
  0xb8   : > { %v548_v51 = vsub.f32 %v526_v14, %v547_v47  ;;  %v1832_v14 = vld [vmem:[%s2630_s4 + $0x4] sm:$0xf]  ;;  %980 = vmatpush.bf16.msra.mxu3 %v1623_v43 }
  0xb9   : > { %v1507_v18 = vor.u32 %v1832_v14, %v1504_v16  ;;  %v1680_v16 = vld [vmem:[%s2633_s7 + $0xe8] sm:$0xf0] }
  0xba   : > { %v549_v55 = vmul.f32 %v548_v51, %v548_v51 }
  0xbb   : > { %694 = vmatpush.bf16.msra.mxu2 %v1507_v18  ;;  %v1598_v18 = vld [vmem:[%s2633_s7 + $0x40] sm:$0xf] }
  0xbc   : > { %v550_v59 = vsel %vm532_vm0, %v549_v55, 0.0  ;;  %981 = vmatpush.bf16.msra.mxu3 %v1615_v53  ;;  %v1667_v53 = vor.u32 %v1872_v46, %v1664_v50 }
  0xbd   : > { %v551_v60 = vrot.slane %v550_v59, 4 }
  0xbf   : > { %v552_v2 = vadd.f32 %v551_v60, %v550_v59  ;;  %1019 = vmatpush.bf16.msrb.mxu2 %v1691_v1 }
  0xc1   : > { %v553_v4 = vrot.slane %v552_v2, 2 }
  0xc3   : > { %v554_v10 = vadd.f32 %v553_v4, %v552_v2  ;;  %v1606_v2 = vld [vmem:[%s2633_s7 + $0x50] sm:$0xf]  ;;  %v1858_v4 = vld [vmem:[%s2633_s7 + $0x54] sm:$0xf] }
  0xc4   : > { %v1607_v7 = vor.u32 %v1859_v3, %v1606_v2  ;;  %v1611_v9 = vor.u32 %v1858_v4, %v1608_v8  ;;  %v1656_v2 = vld [vmem:[%s2633_s7 + $0xb8] sm:$0xf0] }
  0xc5   : > { %v555_v17 = vrot.slane %v554_v10, 1  ;;  %v1659_v4 = vor.u32 %v1870_v63, %v1656_v2 }
  0xc6   : > { %982 = vmatpush.bf16.msra.mxu3 %v1607_v7  ;;  %1008 = vmatpush.bf16.msrb.mxu1 %v1611_v9  ;;  %v1850_v9 = vld [vmem:[%s2633_s7 + $0x14] sm:$0xf] }
  0xc7   : > { %v556_v19 = vadd.f32 %v555_v17, %v554_v10  ;;  %v1678_v10 = vld [vmem:[%s2633_s7 + $0xe0] sm:$0xf]  ;;  %v1683_v17 = vor.u32 %v1876_v12, %v1680_v16  ;;  %v1576_v12 = vld [vmem:[%s2633_s7 + $0x18] sm:$0xf0]  ;;  %v1868_v16 = vld [vmem:[%s2633_s7 + $0xa4] sm:$0xf] }
  0xc8   : > { %v1679_v15 = vor.u32 %v1877_v11, %v1678_v10 }
  0xc9   : > { %v557_v20 = vmul.f32 %v556_v19, %v2088_v41  ;;  %v1857_v19 = vld [vmem:[%s2633_s7 + $0x44] sm:$0xf0]  ;;  %1020 = vmatpush.bf16.msrb.mxu2 %v1683_v17  ;;  %v1648_v17 = vld [vmem:[%s2633_s7 + $0xa8] sm:$0xf0] }
  0xca   : > { %994 = vmatpush.bf16.msrb.mxu0 %v1679_v15  ;;  %v1869_v15 = vld [vmem:[%s2633_s7 + $0xa4] sm:$0xf0] }
  0xcb   : > { %v558_v21 = vadd.f32 1e-05, %v557_v20  ;;  %v1856_v20 = vld [vmem:[%s2633_s7 + $0x44] sm:$0xf] }
  0xcd   : > { %1924 = vrsqrt.f32 %v558_v21  ;;  %vm565_vm3 = vweird.f32 %v558_v21 }
  0xd3   : > { %v1925_v22 = vpop.eup %1924 }
  0xd4   : > { %v560_v23 = vmul.f32 %v1925_v22, %v558_v21  ;;  %vm566_vm2 = vweird.f32 %v1925_v22 }
  0xd5   : > { %vm567_vm4 = vmor %vm565_vm3, %vm566_vm2 }
  0xd6   : > { %v561_v24 = vmul.f32 %v1925_v22, %v560_v23 }
  0xd8   : > { %v562_v25 = vmul.f32 0.5, %v561_v24  ;;  %v1599_v24 = vor.u32 %v1857_v19, %v1598_v18 }
  0xda   : > { %v563_v26 = vsub.f32 1.5, %v562_v25  ;;  %v1600_v25 = vld [vmem:[%s2633_s7 + $0x48] sm:$0xf0]  ;;  %983 = vmatpush.bf16.msra.mxu3 %v1599_v24 }
  0xdc   : > { %v564_v28 = vmul.f32 %v1925_v22, %v563_v26  ;;  %v1603_v26 = vor.u32 %v1856_v20, %v1600_v25  ;;  %v1848_v25 = vld [vmem:[%s2633_s7 + $0x4] sm:$0xf] }
  0xde   : > { %v568_v29 = vsel %vm567_vm4, %v1925_v22, %v564_v28  ;;  %v1875_v28 = vld [vmem:[%s2633_s7 + $0xd4] sm:$0xf0]  ;;  %1009 = vmatpush.bf16.msrb.mxu1 %v1603_v26  ;;  %v1568_v26 = vld [vmem:[%s2633_s7 + $0x8] sm:$0xf0] }
  0xdf   : > { %v569_v30 = vmul.f32 %v568_v29, %v530_v27  ;;  %v1670_v27 = vld [vmem:[%s2633_s7 + $0xd0] sm:$0xf]  ;;  %v1874_v29 = vld [vmem:[%s2633_s7 + $0xd4] sm:$0xf] }
  0xe1   : > { %v570_v31 = vperm.slane %v569_v30, 0 }
  0xe3   : > { %v571_v33 = vmul.f32 %v570_v31, %v548_v51 }
  0xe5   : > { %v575_v34 = vadd.f32 %v1921_v32, %v571_v33  ;;  %v1671_v32 = vor.u32 %v1875_v28, %v1670_v27  ;;  %v1672_v33 = vld [vmem:[%s2633_s7 + $0xd8] sm:$0xf0] }
  0xe7   : > { %v576_v35 = vmax.f32 %v575_v34, 0.0  ;;  %v1675_v34 = vor.u32 %v1874_v29, %v1672_v33  ;;  %995 = vmatpush.bf16.msrb.mxu0 %v1671_v32  ;;  %v1571_v29 = vor.u32 %v1848_v25, %v1568_v26  ;;  %v1867_v32 = vld [vmem:[%s2633_s7 + $0x94] sm:$0xf0]  ;;  %v1750_v26 = vld [vmem:[%s2636_s10 + $0x70] sm:$0xf] }
  0xe9   : > { %v577_v36 = vpack.c.bf16 %v576_v35, %v576_v35  ;;  %v1590_v35 = vld [vmem:[%s2633_s7 + $0x30] sm:$0xf]  ;;  %1021 = vmatpush.bf16.msrb.mxu2 %v1675_v34  ;;  %v1866_v34 = vld [vmem:[%s2633_s7 + $0x94] sm:$0xf] }
  0xeb   : > { %682 = vmatmul.bf16.vlgmr.msra.gmra.mxu1 %v577_v36  ;;  %695 = vmatmul.bf16.vlgmr.msra.gmra.mxu2 %v577_v36  ;;  %v1855_v36 = vld [vmem:[%s2633_s7 + $0x34] sm:$0xf0] }
  0xec   : > { %v1591_v40 = vor.u32 %v1855_v36, %v1590_v35  ;;  %996 = vmatpush.bf16.msrb.mxu0 %v1663_v49  ;;  %v1640_v35 = vld [vmem:[%s2633_s7 + $0x98] sm:$0xf0] }
  0xed   : > { %1022 = vmatpush.bf16.msrb.mxu2 %v1667_v53 }
  0xee   : > { %984 = vmatpush.bf16.msra.mxu3 %v1591_v40 }
  0xf1   : > { %1023 = vmatpush.bf16.msrb.mxu2 %v1659_v4 }
 0x168   : > { %v2159_v37 = vpop.f32.mrf.mxu1 }
 0x169   : > { %v702_v38 = vsel %vm532_vm0, %v2159_v37, 0.0 }
 0x16a   : > { %v703_v42 = vrot.slane %v702_v38, 4 }
 0x16c   : > { %v704_v47 = vadd.f32 %v703_v42, %v702_v38  ;;  %v1592_v42 = vld [vmem:[%s2633_s7 + $0x38] sm:$0xf0] }
 0x16e   : > { %v705_v51 = vrot.slane %v704_v47, 2  ;;  %v2184_v52 = vpop.f32.mrf.mxu2 }
 0x16f   : > { %v709_v55 = vsel %vm532_vm0, %v2184_v52, 0.0 }
 0x170   : > { %v706_v59 = vadd.f32 %v705_v51, %v704_v47  ;;  %v710_v60 = vrot.slane %v709_v55, 4  ;;  %v685_v61 = vpop.f32.mrf.mxu1 }
 0x172   : > { %v707_v5 = vrot.slane %v706_v59, 1  ;;  %v711_v6 = vadd.f32 %v710_v60, %v709_v55  ;;  %v1853_v55 = vld [vmem:[%s2633_s7 + $0x24] sm:$0xf0] }
 0x173   : > { %v1583_v57 = vor.u32 %v1853_v55, %v1582_v54  ;;  %v700_v55 = vld [vmem:[%s2631_s5] sm:$0x3] }
 0x174   : > { %v708_v13 = vadd.f32 %v707_v5, %v706_v59  ;;  %v712_v14 = vrot.slane %v711_v6, 2  ;;  %v1584_v59 = vld [vmem:[%s2633_s7 + $0x28] sm:$0xf0]  ;;  %v1574_v5 = vld [vmem:[%s2633_s7 + $0x10] sm:$0xf] }
 0x175   : > { %v1587_v61 = vor.u32 %v1852_v58, %v1584_v59  ;;  %985 = vmatpush.bf16.msra.mxu3 %v1583_v57 }
 0x176   : > { %v716_v21 = vmul.f32 %v708_v13, %v2088_v41  ;;  %v713_v22 = vadd.f32 %v712_v14, %v711_v6  ;;  %v698_v23 = vpop.f32.mrf.mxu2  ;;  %v1851_v6 = vld [vmem:[%s2633_s7 + $0x14] sm:$0xf0]  ;;  %v1646_v13 = vld [vmem:[%s2633_s7 + $0xa0] sm:$0xf]  ;;  %v1579_v14 = vor.u32 %v1850_v9, %v1576_v12 }
 0x177   : > { %v1575_v8 = vor.u32 %v1851_v6, %v1574_v5  ;;  %v1647_v20 = vor.u32 %v1869_v15, %v1646_v13  ;;  %v1849_v23 = vld [vmem:[%s2633_s7 + $0x4] sm:$0xf0]  ;;  %v762_v5 = vperm.slane %v700_v55, 1 }
 0x178   : > { %v2250_v30 = vsub.f32 %v2159_v37, %v716_v21  ;;  %v714_v31 = vrot.slane %v713_v22, 1  ;;  %v1854_v37 = vld [vmem:[%s2633_s7 + $0x34] sm:$0xf]  ;;  %v1651_v21 = vor.u32 %v1868_v16, %v1648_v17 }
 0x179   : > { %v1595_v43 = vor.u32 %v1854_v37, %v1592_v42  ;;  %986 = vmatpush.bf16.msra.mxu3 %v1575_v8  ;;  %v1630_v42 = vld [vmem:[%s2633_s7 + $0x80] sm:$0xf] }
 0x17a   : > { %v720_v38 = vmul.f32 %v2250_v30, %v2250_v30  ;;  %v715_v39 = vadd.f32 %v714_v31, %v713_v22  ;;  %v1566_v22 = vld [vmem:[%s2633_s7] sm:$0xf]  ;;  %1024 = vmatpush.bf16.msrb.mxu2 %v1651_v21  ;;  %v1638_v31 = vld [vmem:[%s2633_s7 + $0x90] sm:$0xf] }
 0x17b   : > { %1010 = vmatpush.bf16.msrb.mxu1 %v1595_v43  ;;  %v1567_v24 = vor.u32 %v1849_v23, %v1566_v22  ;;  %v1639_v33 = vor.u32 %v1867_v32, %v1638_v31  ;;  %v1865_v43 = vld [vmem:[%s2633_s7 + $0x84] sm:$0xf0]  ;;  %v1894_v31 = vld [vmem:[%s2636_s10 + $0x74] sm:$0xf]  ;;  %v1752_v32 = vld [vmem:[%s2636_s10 + $0x78] sm:$0xf0] }
 0x17c   : > { %v722_v47 = vsel %vm532_vm0, %v720_v38, 0.0  ;;  %v717_v48 = vmul.f32 %v715_v39, %v2088_v41  ;;  %v1643_v38 = vor.u32 %v1866_v34, %v1640_v35 }
 0x17d   : > { %v723_v51 = vrot.slane %v722_v47, 4  ;;  %987 = vmatpush.bf16.msra.mxu3 %v1567_v24 }
 0x17e   : > { %v2290_v56 = vsub.f32 %v2184_v52, %v717_v48  ;;  %v1871_v52 = vld [vmem:[%s2633_s7 + $0xb4] sm:$0xf0]  ;;  %1025 = vmatpush.bf16.msrb.mxu2 %v1643_v38  ;;  %v1635_v48 = vor.u32 %v1864_v44, %v1632_v45  ;;  %v1893_v38 = vld [vmem:[%s2636_s10 + $0x64] sm:$0xf0]  ;;  %v1744_v45 = vld [vmem:[%s2636_s10 + $0x68] sm:$0xf0] }
 0x17f   : > { %v724_v60 = vadd.f32 %v723_v51, %v722_v47  ;;  %v1655_v1 = vor.u32 %v1871_v52, %v1654_v62  ;;  %1011 = vmatpush.bf16.msrb.mxu1 %v1587_v61  ;;  %v1631_v47 = vor.u32 %v1865_v43, %v1630_v42  ;;  %v761_v61 = vperm.slane %v700_v55, 0  ;;  %v1816_v55 = vld [vmem:[%s2636_s10 + $0xf8] sm:$0xf0] }
 0x180   : > { %v721_v0 = vmul.f32 %v2290_v56, %v2290_v56 }
 0x181   : > { %v725_v3 = vrot.slane %v724_v60, 2  ;;  %997 = vmatpush.bf16.msrb.mxu0 %v1655_v1 }
 0x182   : > { %v729_v7 = vsel %vm532_vm0, %v721_v0, 0.0  ;;  %1026 = vmatpush.bf16.msrb.mxu2 %v1635_v48  ;;  %v701_v0 = vld [vmem:[%s2632_s6] sm:$0x3]  ;;  %v1814_v48 = vld [vmem:[%s2636_s10 + $0xf0] sm:$0xf] }
 0x183   : > { %v726_v10 = vadd.f32 %v725_v3, %v724_v60  ;;  %v730_v11 = vrot.slane %v729_v7, 4  ;;  %1012 = vmatpush.bf16.msrb.mxu1 %v1579_v14  ;;  %v772_v6 = vperm.slane %v701_v0, 0  ;;  %v773_v13 = vperm.slane %v701_v0, 1 }
 0x185   : > { %v727_v18 = vrot.slane %v726_v10, 1  ;;  %v731_v19 = vadd.f32 %v730_v11, %v729_v7  ;;  %998 = vmatpush.bf16.msrb.mxu0 %v1647_v20 }
 0x187   : > { %v728_v27 = vadd.f32 %v727_v18, %v726_v10  ;;  %v732_v28 = vrot.slane %v731_v19, 2  ;;  %1013 = vmatpush.bf16.msrb.mxu1 %v1571_v29 }
 0x189   : > { %v736_v36 = vmul.f32 %v728_v27, %v2088_v41  ;;  %v733_v37 = vadd.f32 %v732_v28, %v731_v19  ;;  %999 = vmatpush.bf16.msrb.mxu0 %v1639_v33  ;;  %v1895_v27 = vld [vmem:[%s2636_s10 + $0x74] sm:$0xf0]  ;;  %v1755_v33 = vor.u32 %v1894_v31, %v1752_v32  ;;  %v1720_v31 = vld [vmem:[%s2636_s10 + $0x38] sm:$0xf0] }
 0x18a   : > { %v1751_v29 = vor.u32 %v1895_v27, %v1750_v26  ;;  %v1887_v26 = vld [vmem:[%s2636_s10 + $0x34] sm:$0xf0] }
 0x18b   : > { %v738_v39 = vadd.f32 1e-05, %v736_v36  ;;  %v734_v40 = vrot.slane %v733_v37, 1  ;;  %1338 = vmatpush.bf16.msra.mxu1 %v1755_v33  ;;  %v1790_v33 = vld [vmem:[%s2636_s10 + $0xc0] sm:$0xf] }
 0x18c   : > { %1312 = vmatpush.bf16.msrb.mxu3 %v1751_v29 }
 0x18d   : > { %1926 = vrsqrt.f32 %v738_v39  ;;  %v735_v46 = vadd.f32 %v734_v40, %v733_v37  ;;  %1000 = vmatpush.bf16.msrb.mxu0 %v1631_v47  ;;  %vm746_vm6 = vweird.f32 %v738_v39  ;;  %v1742_v37 = vld [vmem:[%s2636_s10 + $0x60] sm:$0xf] }
 0x18e   : > { %v1743_v44 = vor.u32 %v1893_v38, %v1742_v37 }
 0x18f   : > { %v737_v49 = vmul.f32 %v735_v46, %v2088_v41 }
 0x190   : > { %1313 = vmatpush.bf16.msrb.mxu3 %v1743_v44  ;;  %v1710_v44 = vld [vmem:[%s2636_s10 + $0x20] sm:$0xf] }
 0x191   : > { %v739_v50 = vadd.f32 1e-05, %v737_v49  ;;  %v1911_v49 = vld [vmem:[%s2636_s10 + $0xf4] sm:$0xf0] }
 0x193   : > { %v1927_v51 = vpop.eup %1926  ;;  %1928 = vrsqrt.f32 %v739_v50  ;;  %vm756_vm9 = vweird.f32 %v739_v50 }
 0x194   : > { %v741_v53 = vmul.f32 %v1927_v51, %v738_v39  ;;  %vm747_vm5 = vweird.f32 %v1927_v51  ;;  %v1892_v39 = vld [vmem:[%s2636_s10 + $0x64] sm:$0xf] }
 0x195   : > { %vm748_vm7 = vmor %vm746_vm6, %vm747_vm5  ;;  %v1747_v47 = vor.u32 %v1892_v39, %v1744_v45  ;;  %v1885_v45 = vld [vmem:[%s2636_s10 + $0x24] sm:$0xf0] }
 0x196   : > { %v742_v54 = vmul.f32 %v1927_v51, %v741_v53  ;;  %v1815_v53 = vor.u32 %v1911_v49, %v1814_v48  ;;  %v1884_v48 = vld [vmem:[%s2636_s10 + $0x24] sm:$0xf]  ;;  %v1712_v49 = vld [vmem:[%s2636_s10 + $0x28] sm:$0xf0] }
 0x197   : > { %1339 = vmatpush.bf16.msra.mxu1 %v1747_v47  ;;  %v1711_v47 = vor.u32 %v1885_v45, %v1710_v44  ;;  %v1032_v45 = vld [vmem:[%s2634_s8] sm:$0x3] }
 0x198   : > { %v743_v57 = vmul.f32 0.5, %v742_v54  ;;  %v1910_v54 = vld [vmem:[%s2636_s10 + $0xf4] sm:$0xf]  ;;  %1325 = vmatpush.bf16.msra.mxu0 %v1815_v53  ;;  %v1782_v53 = vld [vmem:[%s2636_s10 + $0xb0] sm:$0xf] }
 0x199   : > { %v1929_v58 = vpop.eup %1928 }
 0x19a   : > { %v744_v59 = vsub.f32 1.5, %v743_v57  ;;  %v751_v60 = vmul.f32 %v1929_v58, %v739_v50  ;;  %vm757_vm8 = vweird.f32 %v1929_v58  ;;  %v1819_v57 = vor.u32 %v1910_v54, %v1816_v55  ;;  %v1902_v54 = vld [vmem:[%s2636_s10 + $0xb4] sm:$0xf] }
 0x19b   : > { %vm758_vm10 = vmor %vm756_vm9, %vm757_vm8 }
 0x19c   : > { %v745_v62 = vmul.f32 %v1927_v51, %v744_v59  ;;  %v752_v52 = vmul.f32 %v1929_v58, %v751_v60  ;;  %v1891_v59 = vld [vmem:[%s2636_s10 + $0x54] sm:$0xf0]  ;;  %v1890_v60 = vld [vmem:[%s2636_s10 + $0x54] sm:$0xf]  ;;  %1351 = vmatpush.bf16.msra.mxu2 %v1819_v57 }
 0x19e   : > { %v749_v63 = vsel %vm748_vm7, %v1927_v51, %v745_v62  ;;  %v753_v1 = vmul.f32 0.5, %v752_v52 }
 0x19f   : > { %v765_v2 = vmul.f32 %v761_v61, %v749_v63  ;;  %v1736_v63 = vld [vmem:[%s2636_s10 + $0x58] sm:$0xf0] }
 0x1a0   : > { %v754_v3 = vsub.f32 1.5, %v753_v1  ;;  %v1739_v0 = vor.u32 %v1890_v60, %v1736_v63  ;;  %v1806_v1 = vld [vmem:[%s2636_s10 + $0xe0] sm:$0xf] }
 0x1a1   : > { %v767_v4 = vperm.slane %v765_v2, 0  ;;  %v1909_v2 = vld [vmem:[%s2636_s10 + $0xe4] sm:$0xf0] }
 0x1a2   : > { %v755_v7 = vmul.f32 %v1929_v58, %v754_v3  ;;  %v1908_v3 = vld [vmem:[%s2636_s10 + $0xe4] sm:$0xf]  ;;  %1340 = vmatpush.bf16.msra.mxu1 %v1739_v0  ;;  %v1882_v0 = vld [vmem:[%s2636_s10 + $0x14] sm:$0xf] }
 0x1a3   : > { %v769_v8 = vmul.f32 %v767_v4, %v2250_v30 }
 0x1a4   : > { %v759_v9 = vsel %vm758_vm10, %v1929_v58, %v755_v7  ;;  %v1734_v58 = vld [vmem:[%s2636_s10 + $0x50] sm:$0xf]  ;;  %v1807_v7 = vor.u32 %v1909_v2, %v1806_v1 }
 0x1a5   : > { %v766_v10 = vmul.f32 %v762_v5, %v759_v9  ;;  %v776_v11 = vadd.f32 %v772_v6, %v769_v8  ;;  %v1735_v52 = vor.u32 %v1891_v59, %v1734_v58  ;;  %v1808_v8 = vld [vmem:[%s2636_s10 + $0xe8] sm:$0xf0]  ;;  %v1784_v58 = vld [vmem:[%s2636_s10 + $0xb8] sm:$0xf0] }
 0x1a6   : > { %v1811_v9 = vor.u32 %v1908_v3, %v1808_v8  ;;  %1326 = vmatpush.bf16.msra.mxu0 %v1807_v7  ;;  %v1787_v60 = vor.u32 %v1902_v54, %v1784_v58  ;;  %v1704_v3 = vld [vmem:[%s2636_s10 + $0x18] sm:$0xf0]  ;;  %v1900_v7 = vld [vmem:[%s2636_s10 + $0xa4] sm:$0xf]  ;;  %v1776_v8 = vld [vmem:[%s2636_s10 + $0xa8] sm:$0xf0] }
 0x1a7   : > { %v768_v12 = vperm.slane %v766_v10, 0  ;;  %v778_v14 = vmax.f32 %v776_v11, 0.0  ;;  %1314 = vmatpush.bf16.msrb.mxu3 %v1735_v52  ;;  %v1726_v10 = vld [vmem:[%s2636_s10 + $0x40] sm:$0xf]  ;;  %v1889_v11 = vld [vmem:[%s2636_s10 + $0x44] sm:$0xf0] }
 0x1a8   : > { %1352 = vmatpush.bf16.msra.mxu2 %v1811_v9  ;;  %v1033_v54 = vld [vmem:[%s2635_s9] sm:$0x3] }
 0x1a9   : > { %v770_v15 = vmul.f32 %v768_v12, %v2290_v56  ;;  %v786_v16 = vpack.c.bf16 %v778_v14, %v778_v14  ;;  %v1888_v12 = vld [vmem:[%s2636_s10 + $0x44] sm:$0xf] }
 0x1ab   : > { %v777_v17 = vadd.f32 %v773_v13, %v770_v15  ;;  %988 = vmatmul.bf16.vlgmr.msra.gmra.mxu3 %v786_v16  ;;  %1014 = vmatmul.bf16.vlgmr.msrb.gmra.mxu1 %v786_v16  ;;  %v1727_v15 = vor.u32 %v1889_v11, %v1726_v10  ;;  %v1728_v16 = vld [vmem:[%s2636_s10 + $0x48] sm:$0xf0] }
 0x1ad   : > { %v779_v18 = vmax.f32 %v777_v17, 0.0  ;;  %v1731_v17 = vor.u32 %v1888_v12, %v1728_v16  ;;  %1315 = vmatpush.bf16.msrb.mxu3 %v1727_v15  ;;  %v1779_v12 = vor.u32 %v1900_v7, %v1776_v8  ;;  %v1880_v16 = vld [vmem:[%s2636_s10 + $0x4] sm:$0xf] }
 0x1af   : > { %v782_v30 = vrot.slane %v779_v18, 6  ;;  %v787_v19 = vpack.c.bf16 %v779_v18, %v779_v18  ;;  %v1798_v18 = vld [vmem:[%s2636_s10 + $0xd0] sm:$0xf]  ;;  %1341 = vmatpush.bf16.msra.mxu1 %v1731_v17  ;;  %v1696_v17 = vld [vmem:[%s2636_s10 + $0x8] sm:$0xf0] }
 0x1b1   : > { %v783_v20 = vsel %vm532_vm0, %v778_v14, %v782_v30  ;;  %1001 = vmatmul.bf16.vlgmr.msrb.gmra.mxu0 %v787_v19  ;;  %1027 = vmatmul.bf16.vlgmr.msrb.gmra.mxu2 %v787_v19  ;;  %v1907_v30 = vld [vmem:[%s2636_s10 + $0xd4] sm:$0xf0]  ;;  %v1906_v19 = vld [vmem:[%s2636_s10 + $0xd4] sm:$0xf] }
 0x1b2   : > { %785 = vst [vmem:[%s445_s23] sm:$0xf] %v783_v20 }
 0x228   : > { %v1015_v21 = vpop.f32.mrf.mxu1 }
 0x22e   : > { %v989_v56 = vpop.f32.mrf.mxu3  ;;  %v1002_v22 = vpop.f32.mrf.mxu0 }
 0x22f   : > { %v2390_v23 = vadd.f32 %v1002_v22, %v989_v56  ;;  %v1799_v56 = vor.u32 %v1907_v30, %v1798_v18  ;;  %v1800_v22 = vld [vmem:[%s2636_s10 + $0xd8] sm:$0xf0] }
 0x230   : > { %v1017_v24 = vpop.f32.mrf.mxu1 }
 0x231   : > { %v1034_v25 = vsel %vm532_vm0, %v2390_v23, 0.0  ;;  %v1803_v24 = vor.u32 %v1906_v19, %v1800_v22  ;;  %1327 = vmatpush.bf16.msra.mxu0 %v1799_v56  ;;  %v1699_v19 = vor.u32 %v1880_v16, %v1696_v17  ;;  %v1899_v56 = vld [vmem:[%s2636_s10 + $0x94] sm:$0xf0] }
 0x232   : > { %v1035_v28 = vrot.slane %v1034_v25, 4 }
 0x233   : > { %1353 = vmatpush.bf16.msra.mxu2 %v1803_v24  ;;  %v1898_v24 = vld [vmem:[%s2636_s10 + $0x94] sm:$0xf] }
 0x234   : > { %v1036_v34 = vadd.f32 %v1035_v28, %v1034_v25  ;;  %v1028_v35 = vpop.f32.mrf.mxu2  ;;  %v1718_v25 = vld [vmem:[%s2636_s10 + $0x30] sm:$0xf] }
 0x235   : > { %v2406_v36 = vadd.f32 %v1028_v35, %v1015_v21  ;;  %v1719_v29 = vor.u32 %v1887_v26, %v1718_v25  ;;  %v1904_v35 = vld [vmem:[%s2636_s10 + $0xc4] sm:$0xf]  ;;  %v1768_v25 = vld [vmem:[%s2636_s10 + $0x98] sm:$0xf0] }
 0x236   : > { %v1037_v40 = vrot.slane %v1036_v34, 2  ;;  %v991_v42 = vpop.f32.mrf.mxu3  ;;  %v1004_v43 = vpop.f32.mrf.mxu0 }
 0x237   : > { %v1041_v46 = vsel %vm532_vm0, %v2406_v36, 0.0  ;;  %1316 = vmatpush.bf16.msrb.mxu3 %v1719_v29 }
 0x238   : > { %v1038_v50 = vadd.f32 %v1037_v40, %v1036_v34  ;;  %v1042_v51 = vrot.slane %v1041_v46, 4  ;;  %v1905_v34 = vld [vmem:[%s2636_s10 + $0xc4] sm:$0xf0]  ;;  %v1792_v40 = vld [vmem:[%s2636_s10 + $0xc8] sm:$0xf0] }
 0x239   : > { %v1791_v39 = vor.u32 %v1905_v34, %v1790_v33  ;;  %v1795_v43 = vor.u32 %v1904_v35, %v1792_v40  ;;  %v1896_v33 = vld [vmem:[%s2636_s10 + $0x84] sm:$0xf]  ;;  %v1760_v34 = vld [vmem:[%s2636_s10 + $0x88] sm:$0xf0] }
 0x23a   : > { %v1039_v61 = vrot.slane %v1038_v50, 1  ;;  %v1043_v62 = vadd.f32 %v1042_v51, %v1041_v46  ;;  %v1715_v51 = vor.u32 %v1884_v48, %v1712_v49 }
 0x23b   : > { %1328 = vmatpush.bf16.msra.mxu0 %v1791_v39  ;;  %1354 = vmatpush.bf16.msra.mxu2 %v1795_v43 }
 0x23c   : > { %v1040_v4 = vadd.f32 %v1039_v61, %v1038_v50  ;;  %v1044_v5 = vrot.slane %v1043_v62, 2  ;;  %v1030_v6 = vpop.f32.mrf.mxu2  ;;  %1317 = vmatpush.bf16.msrb.mxu3 %v1711_v47  ;;  %v1702_v61 = vld [vmem:[%s2636_s10 + $0x10] sm:$0xf] }
 0x23d   : > { %v1901_v6 = vld [vmem:[%s2636_s10 + $0xa4] sm:$0xf0] }
 0x23e   : > { %v1048_v13 = vmul.f32 %v1040_v4, %v2088_v41  ;;  %v1045_v14 = vadd.f32 %v1044_v5, %v1043_v62  ;;  %v1883_v62 = vld [vmem:[%s2636_s10 + $0x14] sm:$0xf0]  ;;  %v1774_v4 = vld [vmem:[%s2636_s10 + $0xa0] sm:$0xf]  ;;  %v1707_v5 = vor.u32 %v1882_v0, %v1704_v3  ;;  %v1105_v3 = vperm.slane %v1033_v54, 1 }
 0x23f   : > { %v1703_v63 = vor.u32 %v1883_v62, %v1702_v61  ;;  %1355 = vmatpush.bf16.msra.mxu2 %v1787_v60  ;;  %v1775_v11 = vor.u32 %v1901_v6, %v1774_v4  ;;  %v1094_v60 = vperm.slane %v1032_v45, 1  ;;  %v1104_v61 = vperm.slane %v1033_v54, 0 }
 0x240   : > { %v2481_v20 = vsub.f32 %v2390_v23, %v1048_v13  ;;  %v1046_v21 = vrot.slane %v1045_v14, 1  ;;  %v1886_v23 = vld [vmem:[%s2636_s10 + $0x34] sm:$0xf]  ;;  %v1694_v13 = vld [vmem:[%s2636_s10] sm:$0xf] }
 0x241   : > { %v1723_v32 = vor.u32 %v1886_v23, %v1720_v31  ;;  %1318 = vmatpush.bf16.msrb.mxu3 %v1703_v63  ;;  %v1758_v31 = vld [vmem:[%s2636_s10 + $0x80] sm:$0xf] }
 0x242   : > { %v1052_v27 = vmul.f32 %v2481_v20, %v2481_v20  ;;  %v1047_v28 = vadd.f32 %v1046_v21, %v1045_v14  ;;  %v1881_v14 = vld [vmem:[%s2636_s10 + $0x4] sm:$0xf0]  ;;  %v1766_v21 = vld [vmem:[%s2636_s10 + $0x90] sm:$0xf] }
 0x243   : > { %1342 = vmatpush.bf16.msra.mxu1 %v1723_v32  ;;  %v1695_v15 = vor.u32 %v1881_v14, %v1694_v13  ;;  %1356 = vmatpush.bf16.msra.mxu2 %v1779_v12  ;;  %v1767_v22 = vor.u32 %v1899_v56, %v1766_v21  ;;  %v1897_v32 = vld [vmem:[%s2636_s10 + $0x84] sm:$0xf0] }
 0x244   : > { %v1054_v37 = vsel %vm532_vm0, %v1052_v27, 0.0  ;;  %v1049_v38 = vmul.f32 %v1047_v28, %v2088_v41  ;;  %v1771_v27 = vor.u32 %v1898_v24, %v1768_v25 }
 0x245   : > { %v1055_v42 = vrot.slane %v1054_v37, 4  ;;  %1319 = vmatpush.bf16.msrb.mxu3 %v1695_v15 }
 0x246   : > { %v2521_v46 = vsub.f32 %v2406_v36, %v1049_v38  ;;  %v1903_v36 = vld [vmem:[%s2636_s10 + $0xb4] sm:$0xf0]  ;;  %v1763_v38 = vor.u32 %v1896_v33, %v1760_v34 }
 0x247   : > { %v1056_v50 = vadd.f32 %v1055_v42, %v1054_v37  ;;  %v1783_v57 = vor.u32 %v1903_v36, %v1782_v53  ;;  %1343 = vmatpush.bf16.msra.mxu1 %v1715_v51  ;;  %1357 = vmatpush.bf16.msra.mxu2 %v1771_v27  ;;  %v1759_v37 = vor.u32 %v1897_v32, %v1758_v31  ;;  %v1093_v51 = vperm.slane %v1032_v45, 0 }
 0x248   : > { %v1053_v55 = vmul.f32 %v2521_v46, %v2521_v46 }
 0x249   : > { %v1057_v59 = vrot.slane %v1056_v50, 2  ;;  %1329 = vmatpush.bf16.msra.mxu0 %v1783_v57 }
 0x24a   : > { %v1061_v52 = vsel %vm532_vm0, %v1053_v55, 0.0 }
 0x24b   : > { %v1058_v1 = vadd.f32 %v1057_v59, %v1056_v50  ;;  %v1062_v2 = vrot.slane %v1061_v52, 4  ;;  %1344 = vmatpush.bf16.msra.mxu1 %v1707_v5  ;;  %1358 = vmatpush.bf16.msra.mxu2 %v1763_v38 }
 0x24d   : > { %v1059_v9 = vrot.slane %v1058_v1, 1  ;;  %v1063_v10 = vadd.f32 %v1062_v2, %v1061_v52  ;;  %1330 = vmatpush.bf16.msra.mxu0 %v1775_v11 }
 0x24f   : > { %v1060_v18 = vadd.f32 %v1059_v9, %v1058_v1  ;;  %v1064_v30 = vrot.slane %v1063_v10, 2  ;;  %1345 = vmatpush.bf16.msra.mxu1 %v1699_v19 }
 0x251   : > { %v1068_v26 = vmul.f32 %v1060_v18, %v2088_v41  ;;  %v1065_v23 = vadd.f32 %v1064_v30, %v1063_v10  ;;  %1331 = vmatpush.bf16.msra.mxu0 %v1767_v22 }
 0x253   : > { %v1070_v28 = vadd.f32 1e-05, %v1068_v26  ;;  %v1066_v29 = vrot.slane %v1065_v23, 1 }
 0x255   : > { %1930 = vrsqrt.f32 %v1070_v28  ;;  %v1067_v35 = vadd.f32 %v1066_v29, %v1065_v23  ;;  %1332 = vmatpush.bf16.msra.mxu0 %v1759_v37  ;;  %vm1078_vm12 = vweird.f32 %v1070_v28 }
 0x257   : > { %v1069_v39 = vmul.f32 %v1067_v35, %v2088_v41 }
 0x259   : > { %v1071_v40 = vadd.f32 1e-05, %v1069_v39 }
 0x25b   : > { %v1931_v42 = vpop.eup %1930  ;;  %1932 = vrsqrt.f32 %v1071_v40  ;;  %vm1088_vm15 = vweird.f32 %v1071_v40 }
 0x25c   : > { %v1073_v43 = vmul.f32 %v1931_v42, %v1070_v28  ;;  %vm1079_vm11 = vweird.f32 %v1931_v42 }
 0x25d   : > { %vm1080_vm13 = vmor %vm1078_vm12, %vm1079_vm11 }
 0x25e   : > { %v1074_v44 = vmul.f32 %v1931_v42, %v1073_v43 }
 0x260   : > { %v1075_v47 = vmul.f32 0.5, %v1074_v44 }
 0x261   : > { %v1933_v48 = vpop.eup %1932 }
 0x262   : > { %v1076_v49 = vsub.f32 1.5, %v1075_v47  ;;  %v1083_v50 = vmul.f32 %v1933_v48, %v1071_v40  ;;  %vm1089_vm14 = vweird.f32 %v1933_v48 }
 0x263   : > { %vm1090_vm1 = vmor %vm1088_vm15, %vm1089_vm14 }
 0x264   : > { %v1077_v53 = vmul.f32 %v1931_v42, %v1076_v49  ;;  %v1084_v41 = vmul.f32 %v1933_v48, %v1083_v50 }
 0x266   : > { %v1081_v36 = vsel %vm1080_vm13, %v1931_v42, %v1077_v53  ;;  %v1085_v55 = vmul.f32 0.5, %v1084_v41 }
 0x267   : > { %v1097_v57 = vmul.f32 %v1093_v51, %v1081_v36 }
 0x268   : > { %v1086_v58 = vsub.f32 1.5, %v1085_v55 }
 0x269   : > { %v1099_v59 = vperm.slane %v1097_v57, 0 }
 0x26a   : > { %v1087_v62 = vmul.f32 %v1933_v48, %v1086_v58 }
 0x26b   : > { %v1101_v52 = vmul.f32 %v1099_v59, %v2481_v20  ;;  %v1146_v20 = vld [vmem:[%s2637_s11] sm:$0x3] }
 0x26c   : > { %v1091_v63 = vsel %vm1090_vm1, %v1933_v48, %v1087_v62  ;;  %v1149_v13 = vperm.slane %v1146_v20, 1  ;;  %v1148_v14 = vperm.slane %v1146_v20, 0 }
 0x26d   : > { %v1098_v0 = vmul.f32 %v1094_v60, %v1091_v63  ;;  %v1108_v1 = vadd.f32 %v1104_v61, %v1101_v52 }
 0x26f   : > { %v1100_v2 = vperm.slane %v1098_v0, 0  ;;  %v1110_v4 = vmax.f32 %v1108_v1, 0.0 }
 0x271   : > { %v1102_v5 = vmul.f32 %v1100_v2, %v2521_v46  ;;  %v1112_v6 = vpack.c.bf16 %v1110_v4, %v1110_v4 }
 0x273   : > { %v1109_v7 = vadd.f32 %v1105_v3, %v1102_v5  ;;  %1320 = vmatmul.bf16.vlgmr.msrb.gmra.mxu3 %v1112_v6  ;;  %1346 = vmatmul.bf16.vlgmr.msra.gmra.mxu1 %v1112_v6 }
 0x275   : > { %v1111_v8 = vmax.f32 %v1109_v7, 0.0 }
 0x277   : > { %v1113_v9 = vpack.c.bf16 %v1111_v8, %v1111_v8 }
 0x279   : > { %1333 = vmatmul.bf16.vlgmr.msra.gmra.mxu0 %v1113_v9  ;;  %1359 = vmatmul.bf16.vlgmr.msra.gmra.mxu2 %v1113_v9 }
 0x2f0   : > { %v1347_v10 = vpop.f32.mrf.mxu1 }
 0x2f1   : > { %v1348_v46 = vadd.f32 %v1347_v10, %v1149_v13 }
 0x2f6   : > { %v1321_v11 = vpop.f32.mrf.mxu3  ;;  %v1334_v12 = vpop.f32.mrf.mxu0 }
 0x2f7   : > { %v1322_v16 = vadd.f32 %v1321_v11, %v1148_v14 }
 0x2f8   : > { %v1349_v15 = vpop.f32.mrf.mxu1 }
 0x2f9   : > { %v1335_v21 = vadd.f32 %v1334_v12, %v1322_v16 }
 0x2fc   : > { %v1360_v17 = vpop.f32.mrf.mxu2 }
 0x2fd   : > { %v1361_v18 = vadd.f32 %v1360_v17, %v1348_v46 }
 0x2fe   : > { %v1323_v30 = vpop.f32.mrf.mxu3  ;;  %v1336_v19 = vpop.f32.mrf.mxu0 }
 0x2ff   : > { %v1366_v56 = vrot.slane %v1361_v18, 6 }
 0x301   : > { %v1367_v22 = vsel %vm532_vm0, %v1335_v21, %v1366_v56 }
 0x302   : > { %1369 = vst [vmem:[%s450_s19] sm:$0xf] %v1367_v22 }
 0x304   : > { %v1362_v24 = vpop.f32.mrf.mxu2 }
 0x305 PF: > { %s24_s25 = sadd.s32 1, %s1940_s25  }
 0x306   : > { %p21_p4 = scmp.ge.s32.totalorder %s24_s25, 4  }
 0x308   :  { %23 = sbr.rel (!%p21_p4) target bundleno = 1 (0x1), region = 110 }

</bundles_post_ra>
